<compile_context>
chip_gen: v6e
topology: v6e:2x2x1
jax: 0.10.0
libtpu: 0.0.40
codegen_flags: <defaults>
</compile_context>

<pallas_src>
import functools

import jax
import jax.numpy as jnp
import numpy as np
from jax import lax
from jax.experimental import pallas as pl
from jax.experimental.pallas import tpu as pltpu


# ----------------------------- Pallas kernel -----------------------------

def _conv3x3_tap_kernel(x_ref, w_ref, o_ref, acc_ref, *, th, wo, cin, cout, coutp, neg_slope):
    """One (batch, row-tile) step of a stride-1 3x3 'same' conv + LeakyReLU.

    x_ref   : (1, Hp, Wp, Cin)    whole padded image of this batch element (resident in VMEM,
                                  re-fetched only when the batch index changes)
    w_ref   : (9, Cin, Coutp)     per-tap weight matrices, Cout lane-padded to Coutp
    o_ref   : (1, th, wo, Cout)   output row tile
    acc_ref : (th*wo, Coutp)      f32 accumulator scratch (VMEM)
    """
    t = pl.program_id(1)
    row0 = t * th                      # first padded-input row for tap dy=0 of this tile
    m = th * wo

    acc_ref[...] = jnp.zeros_like(acc_ref)
    # 9 shifted tap views formed in VMEM; each contributes a (m, Cin) @ (Cin, Coutp) matmul.
    # TODO(synk): for production, cast slab/weights to bf16 here (keep f32 accumulation) for
    #             2x MXU throughput on v5e/v6e; kept f32 so the self-test tolerance holds.
    for k in range(9):
        dy, dx = k // 3, k % 3
        slab = x_ref[0, pl.ds(row0 + dy, th), pl.ds(dx, wo), :]        # (th, wo, cin)
        acc_ref[...] += jnp.dot(slab.reshape(m, cin), w_ref[k],
                                preferred_element_type=jnp.float32)

    acc = acc_ref[...]
    act = jnp.where(acc > 0, acc, neg_slope * acc)                      # LeakyReLU in f32
    if coutp != cout:
        act = act[:, :cout]            # drop lane padding; HBM output keeps true Cout
    o_ref[0] = act.reshape(th, wo, cout).astype(o_ref.dtype)


def _largest_divisor_leq(n, cap):
    cap = int(max(1, min(n, cap)))
    for d in range(cap, 0, -1):
        if n % d == 0:
            return d
    return 1


def conv3x3_leakyrelu_pallas(x_nhwc, w_hwio, *, stride=1, neg_slope=0.1, rows_per_tile=512):
    """3x3 'same'-padded, bias-free conv + LeakyReLU; the 9-tap MAC runs in Pallas.

    x_nhwc : (N, H, W, Cin)        float32
    w_hwio : (3, 3, Cin, Cout)     float32
    returns (N, Ho, Wo, Cout)
    """
    N, H, W, Cin = x_nhwc.shape
    kh, kw, _, Cout = w_hwio.shape
    assert kh == 3 and kw == 3
    pad = kh // 2

    # TODO(synk): the spatial pad still materializes one extra copy of the activation per layer;
    #             handling the 1-pixel halo via masked edge taps in-kernel would remove it.
    xp = jnp.pad(x_nhwc, ((0, 0), (pad, pad), (pad, pad), (0, 0)))
    Hp, Wp = H + 2 * pad, W + 2 * pad
    Ho, Wo = H, W                                   # dense (stride-1) "same" output

    # Lane-pad Cout to a multiple of 128 so MXU output lanes / the f32 accumulator are dense.
    Coutp = ((Cout + 127) // 128) * 128
    w_taps = w_hwio.reshape(kh * kw, Cin, Cout).astype(x_nhwc.dtype)
    if Coutp != Cout:
        w_taps = jnp.pad(w_taps, ((0, 0), (0, 0), (0, Coutp - Cout)))

    # M-tiling: th output rows per grid step -> th*Wo matmul rows (target ~rows_per_tile).
    th = _largest_divisor_leq(Ho, max(1, rows_per_tile // max(1, Wo)))
    n_row_tiles = Ho // th

    # VMEM budget: BlockSpec double-buffers every input/output block.
    itemsize = jnp.dtype(x_nhwc.dtype).itemsize
    vmem_need = (2 * (Hp * Wp * Cin * itemsize                # resident padded image
                      + kh * kw * Cin * Coutp * itemsize      # weights
                      + th * Wo * Cout * itemsize)            # output tile
                 + th * Wo * Coutp * 4)                       # f32 accumulator scratch
    vmem_limit = int(min(max(2 * vmem_need, 32 * 1024 * 1024), 100 * 1024 * 1024))

    kernel = functools.partial(
        _conv3x3_tap_kernel,
        th=th, wo=Wo, cin=Cin, cout=Cout, coutp=Coutp, neg_slope=neg_slope)

    out = pl.pallas_call(
        kernel,
        out_shape=jax.ShapeDtypeStruct((N, Ho, Wo, Cout), x_nhwc.dtype),
        grid_spec=pltpu.PrefetchScalarGridSpec(
            num_scalar_prefetch=0,
            grid=(N, n_row_tiles),
            in_specs=[
                # Whole padded image per batch element; block index depends only on n, so it is
                # DMA'd once and stays resident in VMEM across all row tiles of that image.
                pl.BlockSpec((1, Hp, Wp, Cin), lambda n, t: (n, 0, 0, 0)),
                # Per-tap weights: fetched once, resident for the whole grid.
                pl.BlockSpec((kh * kw, Cin, Coutp), lambda n, t: (0, 0, 0)),
            ],
            out_specs=pl.BlockSpec((1, th, Wo, Cout), lambda n, t: (n, t, 0, 0)),
            scratch_shapes=[pltpu.VMEM((th * Wo, Coutp), jnp.float32)],
        ),
        compiler_params=pltpu.CompilerParams(
            dimension_semantics=("parallel", "parallel"),
            vmem_limit_bytes=vmem_limit,
        ),
    )(xp, w_taps)

    if stride > 1:
        # A strided 'same' conv equals the dense conv subsampled at multiples of the stride.
        # TODO(synk): a native strided-tap path (pl.ds(..., stride=s) on the resident tile)
        #             would avoid the s^2 redundant dense rows/cols computed here.
        out = out[:, ::stride, ::stride, :]
    return out


# --------------------------- VGGNetBlock (JAX) ---------------------------

class VGGNetBlockPallas:
    """Mirror of the PyTorch VGGNetBlock defaults: n_conv layers of 3x3 bias-free conv +
    LeakyReLU(0.1); the first n_conv-1 layers use stride 1, the last layer uses `stride`."""

    def __init__(self, key, in_channels, out_channels, n_conv=1, stride=1):
        self.weights = []   # list of (3, 3, Cin, Cout) HWIO tensors
        self.strides = []
        cin = in_channels
        keys = jax.random.split(key, n_conv)
        for n in range(n_conv):
            s = 1 if n < n_conv - 1 else stride
            fan_in = cin * 3 * 3
            bound = 1.0 / np.sqrt(fan_in)     # kaiming_uniform-style U(-1/sqrt(fan_in), +)
            w = jax.random.uniform(
                keys[n], (3, 3, cin, out_channels),
                minval=-bound, maxval=bound, dtype=jnp.float32)
            self.weights.append(w)
            self.strides.append(s)
            cin = out_channels
        # TODO(synk): use_batch_norm / use_depthwise_separable branches not implemented
        #             (module defaults are False); only the standard Conv2d path is covered.

    def __call__(self, x_nchw):
        # NCHW (PyTorch convention) -> NHWC once; stay NHWC across layers; back to NCHW at end.
        x = jnp.transpose(x_nchw, (0, 2, 3, 1))
        for w, s in zip(self.weights, self.strides):
            x = conv3x3_leakyrelu_pallas(x, w, stride=s, neg_slope=0.1)
        return jnp.transpose(x, (0, 3, 1, 2))


# ------------------------------ reference --------------------------------

def _reference_forward(x_nchw, weights_hwio, strides, neg_slope=0.1):
    out = x_nchw
    for w_hwio, s in zip(weights_hwio, strides):
        w_oihw = jnp.transpose(w_hwio, (3, 2, 0, 1))
        out = lax.conv_general_dilated(
            out, w_oihw, window_strides=(s, s), padding=((1, 1), (1, 1)),
            dimension_numbers=("NCHW", "OIHW", "NCHW"))
        out = jnp.where(out > 0, out, neg_slope * out)
    return out


# --------------------------------- main -----------------------------------

if __name__ == "__main__":
    key = jax.random.PRNGKey(0)
    k_x, k_w = jax.random.split(key)

    N, Cin, H, W = 2, 4, 16, 16
    Cout, n_conv, stride = 8, 2, 1

    x = jax.random.normal(k_x, (N, Cin, H, W), dtype=jnp.float32)

    block = VGGNetBlockPallas(k_w, Cin, Cout, n_conv=n_conv, stride=stride)

    out = jax.block_until_ready(block(x))
    ref = jax.block_until_ready(_reference_forward(x, block.weights, block.strides))

    assert out.shape == ref.shape, (out.shape, ref.shape)
    np.testing.assert_allclose(np.asarray(out), np.asarray(ref), rtol=1e-4, atol=1e-5)

    print("KERNEL_OK")
</pallas_src>

<mosaic_0001>
module attributes {stable_mosaic.version = 11 : i64} {
  func.func @_conv3x3_tap_kernel(%arg0: i32, %arg1: i32, %arg2: memref<1x18x18x4xf32, #tpu.memory_space<vmem>>, %arg3: memref<9x4x128xf32, #tpu.memory_space<vmem>>, %arg4: memref<1x16x16x8xf32, #tpu.memory_space<vmem>>, %arg5: memref<256x128xf32, #tpu.memory_space<vmem>>) attributes {dimension_semantics = [#tpu.dimension_semantics<parallel>, #tpu.dimension_semantics<parallel>], iteration_bounds = array<i64: 2, 1>, scalar_prefetch = 0 : i64, scratch_operands = 1 : i64, tpu.core_type = #tpu.core_type<tc>, window_params = [{transform_indices = @transform_0, window_bounds = array<i64: 1, 18, 18, 4>}, {pipeline_mode = #tpu.pipeline_mode<synchronous>, transform_indices = @transform_1, window_bounds = array<i64: 9, 4, 128>}, {transform_indices = @transform_2, window_bounds = array<i64: 1, 16, 16, 8>}]} {
    %c16_i32 = arith.constant 16 : i32
    %0 = arith.muli %arg1, %c16_i32 : i32
    %cst = arith.constant 0.000000e+00 : f32
    %1 = vector.broadcast %cst : f32 to vector<256x128xf32>
    %c0 = arith.constant 0 : index
    %c0_0 = arith.constant 0 : index
    %2 = vector.load %arg5[%c0, %c0_0] : memref<256x128xf32, #tpu.memory_space<vmem>>, vector<256x128xf32>
    tpu.vector_store %arg5[%c0, %c0_0], %1 {strides = array<i32>} : memref<256x128xf32, #tpu.memory_space<vmem>>, vector<256x128xf32>,
    %c0_i32 = arith.constant 0 : i32
    %3 = arith.addi %0, %c0_i32 : i32
    %c0_1 = arith.constant 0 : index
    %4 = arith.index_cast %3 : i32 to index
    %c0_2 = arith.constant 0 : index
    %c0_3 = arith.constant 0 : index
    %5 = vector.load %arg2[%c0_1, %4, %c0_2, %c0_3] : memref<1x18x18x4xf32, #tpu.memory_space<vmem>>, vector<1x16x16x4xf32>
    %6 = vector.shape_cast %5 : vector<1x16x16x4xf32> to vector<16x16x4xf32>
    %c0_4 = arith.constant 0 : index
    %c0_5 = arith.constant 0 : index
    %7 = vector.load %arg5[%c0_4, %c0_5] : memref<256x128xf32, #tpu.memory_space<vmem>>, vector<256x128xf32>
    %8 = vector.shape_cast %6 : vector<16x16x4xf32> to vector<256x4xf32>
    %c0_6 = arith.constant 0 : index
    %c0_7 = arith.constant 0 : index
    %c0_8 = arith.constant 0 : index
    %9 = vector.load %arg3[%c0_6, %c0_7, %c0_8] : memref<9x4x128xf32, #tpu.memory_space<vmem>>, vector<1x4x128xf32>
    %10 = vector.shape_cast %9 : vector<1x4x128xf32> to vector<4x128xf32>
    %cst_9 = arith.constant dense<0.000000e+00> : vector<256x128xf32>
    %11 = tpu.matmul %8, %10, %cst_9 {dimension_numbers = #tpu.dot_dimension_numbers<[1], [0], [0], [1], [0, 0, 1, 1], [], []>} : vector<256x4xf32>, vector<4x128xf32>, vector<256x128xf32> -> vector<256x128xf32>
    %12 = arith.addf %7, %11 : vector<256x128xf32>
    %c0_10 = arith.constant 0 : index
    %c0_11 = arith.constant 0 : index
    %13 = vector.load %arg5[%c0_10, %c0_11] : memref<256x128xf32, #tpu.memory_space<vmem>>, vector<256x128xf32>
    tpu.vector_store %arg5[%c0_10, %c0_11], %12 {strides = array<i32>} : memref<256x128xf32, #tpu.memory_space<vmem>>, vector<256x128xf32>,
    %c0_i32_12 = arith.constant 0 : i32
    %14 = arith.addi %0, %c0_i32_12 : i32
    %c0_13 = arith.constant 0 : index
    %15 = arith.index_cast %14 : i32 to index
    %c1 = arith.constant 1 : index
    %c0_14 = arith.constant 0 : index
    %16 = vector.load %arg2[%c0_13, %15, %c1, %c0_14] : memref<1x18x18x4xf32, #tpu.memory_space<vmem>>, vector<1x16x16x4xf32>
    %17 = vector.shape_cast %16 : vector<1x16x16x4xf32> to vector<16x16x4xf32>
    %c0_15 = arith.constant 0 : index
    %c0_16 = arith.constant 0 : index
    %18 = vector.load %arg5[%c0_15, %c0_16] : memref<256x128xf32, #tpu.memory_space<vmem>>, vector<256x128xf32>
    %19 = vector.shape_cast %17 : vector<16x16x4xf32> to vector<256x4xf32>
    %c1_17 = arith.constant 1 : index
    %c0_18 = arith.constant 0 : index
    %c0_19 = arith.constant 0 : index
    %20 = vector.load %arg3[%c1_17, %c0_18, %c0_19] : memref<9x4x128xf32, #tpu.memory_space<vmem>>, vector<1x4x128xf32>
    %21 = vector.shape_cast %20 : vector<1x4x128xf32> to vector<4x128xf32>
    %cst_20 = arith.constant dense<0.000000e+00> : vector<256x128xf32>
    %22 = tpu.matmul %19, %21, %cst_20 {dimension_numbers = #tpu.dot_dimension_numbers<[1], [0], [0], [1], [0, 0, 1, 1], [], []>} : vector<256x4xf32>, vector<4x128xf32>, vector<256x128xf32> -> vector<256x128xf32>
    %23 = arith.addf %18, %22 : vector<256x128xf32>
    %c0_21 = arith.constant 0 : index
    %c0_22 = arith.constant 0 : index
    %24 = vector.load %arg5[%c0_21, %c0_22] : memref<256x128xf32, #tpu.memory_space<vmem>>, vector<256x128xf32>
    tpu.vector_store %arg5[%c0_21, %c0_22], %23 {strides = array<i32>} : memref<256x128xf32, #tpu.memory_space<vmem>>, vector<256x128xf32>,
    %c0_i32_23 = arith.constant 0 : i32
    %25 = arith.addi %0, %c0_i32_23 : i32
    %c0_24 = arith.constant 0 : index
    %26 = arith.index_cast %25 : i32 to index
    %c2 = arith.constant 2 : index
    %c0_25 = arith.constant 0 : index
    %27 = vector.load %arg2[%c0_24, %26, %c2, %c0_25] : memref<1x18x18x4xf32, #tpu.memory_space<vmem>>, vector<1x16x16x4xf32>
    %28 = vector.shape_cast %27 : vector<1x16x16x4xf32> to vector<16x16x4xf32>
    %c0_26 = arith.constant 0 : index
    %c0_27 = arith.constant 0 : index
    %29 = vector.load %arg5[%c0_26, %c0_27] : memref<256x128xf32, #tpu.memory_space<vmem>>, vector<256x128xf32>
    %30 = vector.shape_cast %28 : vector<16x16x4xf32> to vector<256x4xf32>
    %c2_28 = arith.constant 2 : index
    %c0_29 = arith.constant 0 : index
    %c0_30 = arith.constant 0 : index
    %31 = vector.load %arg3[%c2_28, %c0_29, %c0_30] : memref<9x4x128xf32, #tpu.memory_space<vmem>>, vector<1x4x128xf32>
    %32 = vector.shape_cast %31 : vector<1x4x128xf32> to vector<4x128xf32>
    %cst_31 = arith.constant dense<0.000000e+00> : vector<256x128xf32>
    %33 = tpu.matmul %30, %32, %cst_31 {dimension_numbers = #tpu.dot_dimension_numbers<[1], [0], [0], [1], [0, 0, 1, 1], [], []>} : vector<256x4xf32>, vector<4x128xf32>, vector<256x128xf32> -> vector<256x128xf32>
    %34 = arith.addf %29, %33 : vector<256x128xf32>
    %c0_32 = arith.constant 0 : index
    %c0_33 = arith.constant 0 : index
    %35 = vector.load %arg5[%c0_32, %c0_33] : memref<256x128xf32, #tpu.memory_space<vmem>>, vector<256x128xf32>
    tpu.vector_store %arg5[%c0_32, %c0_33], %34 {strides = array<i32>} : memref<256x128xf32, #tpu.memory_space<vmem>>, vector<256x128xf32>,
    %c1_i32 = arith.constant 1 : i32
    %36 = arith.addi %0, %c1_i32 : i32
    %c0_34 = arith.constant 0 : index
    %37 = arith.index_cast %36 : i32 to index
    %c0_35 = arith.constant 0 : index
    %c0_36 = arith.constant 0 : index
    %38 = vector.load %arg2[%c0_34, %37, %c0_35, %c0_36] : memref<1x18x18x4xf32, #tpu.memory_space<vmem>>, vector<1x16x16x4xf32>
    %39 = vector.shape_cast %38 : vector<1x16x16x4xf32> to vector<16x16x4xf32>
    %c0_37 = arith.constant 0 : index
    %c0_38 = arith.constant 0 : index
    %40 = vector.load %arg5[%c0_37, %c0_38] : memref<256x128xf32, #tpu.memory_space<vmem>>, vector<256x128xf32>
    %41 = vector.shape_cast %39 : vector<16x16x4xf32> to vector<256x4xf32>
    %c3 = arith.constant 3 : index
    %c0_39 = arith.constant 0 : index
    %c0_40 = arith.constant 0 : index
    %42 = vector.load %arg3[%c3, %c0_39, %c0_40] : memref<9x4x128xf32, #tpu.memory_space<vmem>>, vector<1x4x128xf32>
    %43 = vector.shape_cast %42 : vector<1x4x128xf32> to vector<4x128xf32>
    %cst_41 = arith.constant dense<0.000000e+00> : vector<256x128xf32>
    %44 = tpu.matmul %41, %43, %cst_41 {dimension_numbers = #tpu.dot_dimension_numbers<[1], [0], [0], [1], [0, 0, 1, 1], [], []>} : vector<256x4xf32>, vector<4x128xf32>, vector<256x128xf32> -> vector<256x128xf32>
    %45 = arith.addf %40, %44 : vector<256x128xf32>
    %c0_42 = arith.constant 0 : index
    %c0_43 = arith.constant 0 : index
    %46 = vector.load %arg5[%c0_42, %c0_43] : memref<256x128xf32, #tpu.memory_space<vmem>>, vector<256x128xf32>
    tpu.vector_store %arg5[%c0_42, %c0_43], %45 {strides = array<i32>} : memref<256x128xf32, #tpu.memory_space<vmem>>, vector<256x128xf32>,
    %c1_i32_44 = arith.constant 1 : i32
    %47 = arith.addi %0, %c1_i32_44 : i32
    %c0_45 = arith.constant 0 : index
    %48 = arith.index_cast %47 : i32 to index
    %c1_46 = arith.constant 1 : index
    %c0_47 = arith.constant 0 : index
    %49 = vector.load %arg2[%c0_45, %48, %c1_46, %c0_47] : memref<1x18x18x4xf32, #tpu.memory_space<vmem>>, vector<1x16x16x4xf32>
    %50 = vector.shape_cast %49 : vector<1x16x16x4xf32> to vector<16x16x4xf32>
    %c0_48 = arith.constant 0 : index
    %c0_49 = arith.constant 0 : index
    %51 = vector.load %arg5[%c0_48, %c0_49] : memref<256x128xf32, #tpu.memory_space<vmem>>, vector<256x128xf32>
    %52 = vector.shape_cast %50 : vector<16x16x4xf32> to vector<256x4xf32>
    %c4 = arith.constant 4 : index
    %c0_50 = arith.constant 0 : index
    %c0_51 = arith.constant 0 : index
    %53 = vector.load %arg3[%c4, %c0_50, %c0_51] : memref<9x4x128xf32, #tpu.memory_space<vmem>>, vector<1x4x128xf32>
    %54 = vector.shape_cast %53 : vector<1x4x128xf32> to vector<4x128xf32>
    %cst_52 = arith.constant dense<0.000000e+00> : vector<256x128xf32>
    %55 = tpu.matmul %52, %54, %cst_52 {dimension_numbers = #tpu.dot_dimension_numbers<[1], [0], [0], [1], [0, 0, 1, 1], [], []>} : vector<256x4xf32>, vector<4x128xf32>, vector<256x128xf32> -> vector<256x128xf32>
    %56 = arith.addf %51, %55 : vector<256x128xf32>
    %c0_53 = arith.constant 0 : index
    %c0_54 = arith.constant 0 : index
    %57 = vector.load %arg5[%c0_53, %c0_54] : memref<256x128xf32, #tpu.memory_space<vmem>>, vector<256x128xf32>
    tpu.vector_store %arg5[%c0_53, %c0_54], %56 {strides = array<i32>} : memref<256x128xf32, #tpu.memory_space<vmem>>, vector<256x128xf32>,
    %c1_i32_55 = arith.constant 1 : i32
    %58 = arith.addi %0, %c1_i32_55 : i32
    %c0_56 = arith.constant 0 : index
    %59 = arith.index_cast %58 : i32 to index
    %c2_57 = arith.constant 2 : index
    %c0_58 = arith.constant 0 : index
    %60 = vector.load %arg2[%c0_56, %59, %c2_57, %c0_58] : memref<1x18x18x4xf32, #tpu.memory_space<vmem>>, vector<1x16x16x4xf32>
    %61 = vector.shape_cast %60 : vector<1x16x16x4xf32> to vector<16x16x4xf32>
    %c0_59 = arith.constant 0 : index
    %c0_60 = arith.constant 0 : index
    %62 = vector.load %arg5[%c0_59, %c0_60] : memref<256x128xf32, #tpu.memory_space<vmem>>, vector<256x128xf32>
    %63 = vector.shape_cast %61 : vector<16x16x4xf32> to vector<256x4xf32>
    %c5 = arith.constant 5 : index
    %c0_61 = arith.constant 0 : index
    %c0_62 = arith.constant 0 : index
    %64 = vector.load %arg3[%c5, %c0_61, %c0_62] : memref<9x4x128xf32, #tpu.memory_space<vmem>>, vector<1x4x128xf32>
    %65 = vector.shape_cast %64 : vector<1x4x128xf32> to vector<4x128xf32>
    %cst_63 = arith.constant dense<0.000000e+00> : vector<256x128xf32>
    %66 = tpu.matmul %63, %65, %cst_63 {dimension_numbers = #tpu.dot_dimension_numbers<[1], [0], [0], [1], [0, 0, 1, 1], [], []>} : vector<256x4xf32>, vector<4x128xf32>, vector<256x128xf32> -> vector<256x128xf32>
    %67 = arith.addf %62, %66 : vector<256x128xf32>
    %c0_64 = arith.constant 0 : index
    %c0_65 = arith.constant 0 : index
    %68 = vector.load %arg5[%c0_64, %c0_65] : memref<256x128xf32, #tpu.memory_space<vmem>>, vector<256x128xf32>
    tpu.vector_store %arg5[%c0_64, %c0_65], %67 {strides = array<i32>} : memref<256x128xf32, #tpu.memory_space<vmem>>, vector<256x128xf32>,
    %c2_i32 = arith.constant 2 : i32
    %69 = arith.addi %0, %c2_i32 : i32
    %c0_66 = arith.constant 0 : index
    %70 = arith.index_cast %69 : i32 to index
    %c0_67 = arith.constant 0 : index
    %c0_68 = arith.constant 0 : index
    %71 = vector.load %arg2[%c0_66, %70, %c0_67, %c0_68] : memref<1x18x18x4xf32, #tpu.memory_space<vmem>>, vector<1x16x16x4xf32>
    %72 = vector.shape_cast %71 : vector<1x16x16x4xf32> to vector<16x16x4xf32>
    %c0_69 = arith.constant 0 : index
    %c0_70 = arith.constant 0 : index
    %73 = vector.load %arg5[%c0_69, %c0_70] : memref<256x128xf32, #tpu.memory_space<vmem>>, vector<256x128xf32>
    %74 = vector.shape_cast %72 : vector<16x16x4xf32> to vector<256x4xf32>
    %c6 = arith.constant 6 : index
    %c0_71 = arith.constant 0 : index
    %c0_72 = arith.constant 0 : index
    %75 = vector.load %arg3[%c6, %c0_71, %c0_72] : memref<9x4x128xf32, #tpu.memory_space<vmem>>, vector<1x4x128xf32>
    %76 = vector.shape_cast %75 : vector<1x4x128xf32> to vector<4x128xf32>
    %cst_73 = arith.constant dense<0.000000e+00> : vector<256x128xf32>
    %77 = tpu.matmul %74, %76, %cst_73 {dimension_numbers = #tpu.dot_dimension_numbers<[1], [0], [0], [1], [0, 0, 1, 1], [], []>} : vector<256x4xf32>, vector<4x128xf32>, vector<256x128xf32> -> vector<256x128xf32>
    %78 = arith.addf %73, %77 : vector<256x128xf32>
    %c0_74 = arith.constant 0 : index
    %c0_75 = arith.constant 0 : index
    %79 = vector.load %arg5[%c0_74, %c0_75] : memref<256x128xf32, #tpu.memory_space<vmem>>, vector<256x128xf32>
    tpu.vector_store %arg5[%c0_74, %c0_75], %78 {strides = array<i32>} : memref<256x128xf32, #tpu.memory_space<vmem>>, vector<256x128xf32>,
    %c2_i32_76 = arith.constant 2 : i32
    %80 = arith.addi %0, %c2_i32_76 : i32
    %c0_77 = arith.constant 0 : index
    %81 = arith.index_cast %80 : i32 to index
    %c1_78 = arith.constant 1 : index
    %c0_79 = arith.constant 0 : index
    %82 = vector.load %arg2[%c0_77, %81, %c1_78, %c0_79] : memref<1x18x18x4xf32, #tpu.memory_space<vmem>>, vector<1x16x16x4xf32>
    %83 = vector.shape_cast %82 : vector<1x16x16x4xf32> to vector<16x16x4xf32>
    %c0_80 = arith.constant 0 : index
    %c0_81 = arith.constant 0 : index
    %84 = vector.load %arg5[%c0_80, %c0_81] : memref<256x128xf32, #tpu.memory_space<vmem>>, vector<256x128xf32>
    %85 = vector.shape_cast %83 : vector<16x16x4xf32> to vector<256x4xf32>
    %c7 = arith.constant 7 : index
    %c0_82 = arith.constant 0 : index
    %c0_83 = arith.constant 0 : index
    %86 = vector.load %arg3[%c7, %c0_82, %c0_83] : memref<9x4x128xf32, #tpu.memory_space<vmem>>, vector<1x4x128xf32>
    %87 = vector.shape_cast %86 : vector<1x4x128xf32> to vector<4x128xf32>
    %cst_84 = arith.constant dense<0.000000e+00> : vector<256x128xf32>
    %88 = tpu.matmul %85, %87, %cst_84 {dimension_numbers = #tpu.dot_dimension_numbers<[1], [0], [0], [1], [0, 0, 1, 1], [], []>} : vector<256x4xf32>, vector<4x128xf32>, vector<256x128xf32> -> vector<256x128xf32>
    %89 = arith.addf %84, %88 : vector<256x128xf32>
    %c0_85 = arith.constant 0 : index
    %c0_86 = arith.constant 0 : index
    %90 = vector.load %arg5[%c0_85, %c0_86] : memref<256x128xf32, #tpu.memory_space<vmem>>, vector<256x128xf32>
    tpu.vector_store %arg5[%c0_85, %c0_86], %89 {strides = array<i32>} : memref<256x128xf32, #tpu.memory_space<vmem>>, vector<256x128xf32>,
    %c2_i32_87 = arith.constant 2 : i32
    %91 = arith.addi %0, %c2_i32_87 : i32
    %c0_88 = arith.constant 0 : index
    %92 = arith.index_cast %91 : i32 to index
    %c2_89 = arith.constant 2 : index
    %c0_90 = arith.constant 0 : index
    %93 = vector.load %arg2[%c0_88, %92, %c2_89, %c0_90] : memref<1x18x18x4xf32, #tpu.memory_space<vmem>>, vector<1x16x16x4xf32>
    %94 = vector.shape_cast %93 : vector<1x16x16x4xf32> to vector<16x16x4xf32>
    %c0_91 = arith.constant 0 : index
    %c0_92 = arith.constant 0 : index
    %95 = vector.load %arg5[%c0_91, %c0_92] : memref<256x128xf32, #tpu.memory_space<vmem>>, vector<256x128xf32>
    %96 = vector.shape_cast %94 : vector<16x16x4xf32> to vector<256x4xf32>
    %c8 = arith.constant 8 : index
    %c0_93 = arith.constant 0 : index
    %c0_94 = arith.constant 0 : index
    %97 = vector.load %arg3[%c8, %c0_93, %c0_94] : memref<9x4x128xf32, #tpu.memory_space<vmem>>, vector<1x4x128xf32>
    %98 = vector.shape_cast %97 : vector<1x4x128xf32> to vector<4x128xf32>
    %cst_95 = arith.constant dense<0.000000e+00> : vector<256x128xf32>
    %99 = tpu.matmul %96, %98, %cst_95 {dimension_numbers = #tpu.dot_dimension_numbers<[1], [0], [0], [1], [0, 0, 1, 1], [], []>} : vector<256x4xf32>, vector<4x128xf32>, vector<256x128xf32> -> vector<256x128xf32>
    %100 = arith.addf %95, %99 : vector<256x128xf32>
    %c0_96 = arith.constant 0 : index
    %c0_97 = arith.constant 0 : index
    %101 = vector.load %arg5[%c0_96, %c0_97] : memref<256x128xf32, #tpu.memory_space<vmem>>, vector<256x128xf32>
    tpu.vector_store %arg5[%c0_96, %c0_97], %100 {strides = array<i32>} : memref<256x128xf32, #tpu.memory_space<vmem>>, vector<256x128xf32>,
    %c0_98 = arith.constant 0 : index
    %c0_99 = arith.constant 0 : index
    %102 = vector.load %arg5[%c0_98, %c0_99] : memref<256x128xf32, #tpu.memory_space<vmem>>, vector<256x128xf32>
    %cst_100 = arith.constant 0.000000e+00 : f32
    %103 = vector.broadcast %cst_100 : f32 to vector<256x128xf32>
    %104 = arith.cmpf ogt, %102, %103 : vector<256x128xf32>
    %cst_101 = arith.constant 1.000000e-01 : f32
    %105 = vector.broadcast %cst_101 : f32 to vector<256x128xf32>
    %106 = arith.mulf %105, %102 : vector<256x128xf32>
    %107 = arith.select %104, %102, %106 : vector<256x128xi1>, vector<256x128xf32>
    %108 = vector.extract_strided_slice %107 {offsets = [0, 0], sizes = [256, 8], strides = [1, 1]} : vector<256x128xf32> to vector<256x8xf32>
    %109 = vector.shape_cast %108 : vector<256x8xf32> to vector<16x16x8xf32>
    %c0_102 = arith.constant 0 : index
    %c0_103 = arith.constant 0 : index
    %c0_104 = arith.constant 0 : index
    %c0_105 = arith.constant 0 : index
    %110 = vector.load %arg4[%c0_102, %c0_103, %c0_104, %c0_105] : memref<1x16x16x8xf32, #tpu.memory_space<vmem>>, vector<1x16x16x8xf32>
    %111 = vector.shape_cast %110 : vector<1x16x16x8xf32> to vector<16x16x8xf32>
    %112 = vector.shape_cast %109 : vector<16x16x8xf32> to vector<1x16x16x8xf32>
    tpu.vector_store %arg4[%c0_102, %c0_103, %c0_104, %c0_105], %112 {strides = array<i32>} : memref<1x16x16x8xf32, #tpu.memory_space<vmem>>, vector<1x16x16x8xf32>,
    return
  }
  func.func @transform_0(%arg0: i32, %arg1: i32) -> (i32, i32, i32, i32) {
    %c0_i32 = arith.constant 0 : i32
    %c0_i32_0 = arith.constant 0 : i32
    %c0_i32_1 = arith.constant 0 : i32
    %c0_i32_2 = arith.constant 0 : i32
    return %arg0, %c0_i32, %c0_i32_0, %c0_i32_1 : i32, i32, i32, i32
  }
  func.func @transform_1(%arg0: i32, %arg1: i32) -> (i32, i32, i32) {
    %c0_i32 = arith.constant 0 : i32
    %c0_i32_0 = arith.constant 0 : i32
    %c0_i32_1 = arith.constant 0 : i32
    %c0_i32_2 = arith.constant 0 : i32
    return %c0_i32, %c0_i32_0, %c0_i32_1 : i32, i32, i32
  }
  func.func @transform_2(%arg0: i32, %arg1: i32) -> (i32, i32, i32, i32) {
    %c0_i32 = arith.constant 0 : i32
    %c0_i32_0 = arith.constant 0 : i32
    %c0_i32_1 = arith.constant 0 : i32
    return %arg0, %arg1, %c0_i32, %c0_i32_0 : i32, i32, i32, i32
  }
}

</mosaic_0001>

<bundles_post_ra>
// kernel: tpu_custom_call.1
= control target key start
LH: loop header
LB: loop body
LE: loop exit
PB: predicated region body
PF: predicated region fallthrough
CT: control target
= control target key end

     0   :  { %s5876_s9 = smov 0   ;;  %s5878_s10 = smov 0   ;;  %s7390_s0 = inlined_call_operand.vmem [shape: f32[2,18,18,4], index: 0, kind: input, shape index: {}]   ;;  %s7391_s1 = inlined_call_operand.vmem [shape: f32[9,4,128], index: 1, kind: input, shape index: {}]   ;;  %s7392_s2 = inlined_call_operand.vmem [shape: f32[2,16,16,8], index: 2, kind: output, shape index: {}]  }
   0x1   :  { %s5880_s11 = smov 0  }
   0x2 LB: > { %s24_s12 = sadd.s32 1, %s5855_s10  ;;  %p4559_p0 = scmp.ge.s32.totalorder %s5859_s11, 1  ;;  %s5859_s11 = sphi %s5880_s11, %s12_s11   ;;  %s5855_s10 = sphi %s5878_s10, %s7659_s10   ;;  %s5851_s9 = sphi %s5876_s9, %s7658_s9  }
   0x3   : > { %p26_p1 = scmp.ge.s32.totalorder %s24_s12, 2  ;;  %p126_p2 = scmp.lt.s32.totalorder %s5859_s11, 3 }
   0x5   : > { %s7661_s12 = smov (%p26_p1, %s24_s12), 0  ;;  %p127_p3 = pnand %p4559_p0, %p126_p2 }
   0x7   : > { %130 = sbr.rel (%p127_p3) target bundleno = 509 (0x1fd), region = 28 }
   0xc   : > { %v268_v0 = vld [vmem:[%s7391_s1] sm:$0xf]  ;;  %vm366_vm0 = vcmask 1043456   ;;  %p153_p4 = scmp.lt.s32.totalorder %s5851_s9, 1  ;;  %v4596_v1 = vld [vmem:[%s7391_s1 + $0x4] sm:$0xf] }
   0xd   : > { %5810 = vmatprep.subr.msk.mxu1 %vm366_vm0, %v268_v0  ;;  %5360 = vmatprep.subr.msk.mxu0 %vm366_vm0, %v268_v0  ;;  %v4630_v2 = vld [vmem:[%s7391_s1 + $0x8] sm:$0xf]  ;;  %vm269_vm1 = vcmask 31744   ;;  %v5940_v9 = vld [vmem:[%s7391_s1 + $0xc] sm:$0xf]  ;;  %vm4425_vm2 = vcmask 64512  }
   0xe   : > { %5811 = vmatpush3.msk.msra.mxu1 %vm366_vm0, %v268_v0  ;;  %5361 = vmatpush3.msk.msra.mxu0 %vm366_vm0, %v268_v0  ;;  %s7663_s9 = smov (!%p153_p4, %s5851_s9), 1  ;;  %v5945_v10 = vld [vmem:[%s7391_s1 + $0x10] sm:$0xf]  ;;  %v6104_v43 = vld [vmem:[%s7391_s1 + $0x14] sm:$0xf] }
   0xf   : > { %5410 = vmatprep.subr.msk.mxu1 %vm366_vm0, %v4596_v1  ;;  %5460 = vmatprep.subr.msk.mxu0 %vm366_vm0, %v4630_v2  ;;  %s5812_s19 = smul.u32 432, %s7663_s9  ;;  %v6109_v44 = vld [vmem:[%s7391_s1 + $0x18] sm:$0xf]  ;;  %s5062_s7 = sshll.u32 %s7663_s9, 8 }
  0x10   : > { %s7234_s14 = scalar_lea.vmem %s7392_s2, %s5062_s7 }
  0x11   : > { %s5915_s22 = scalar_lea.vmem %s7390_s0, %s5812_s19 }
  0x12   : > { %v204_v3 = vld [vmem:[%s5915_s22] sm:$0xff]  ;;  %v205_v5 = vld [vmem:[%s5915_s22 + $0x8] sm:$0xff]  ;;  %v5929_v7 = vld [vmem:[%s5915_s22 + $0x18] sm:$0xff] }
  0x13   : > { %v5919_v4 = vld [vmem:[%s5915_s22 + $0xc0] sm:$0xff]  ;;  %5362 = vmatprep.mubr.msk.f32.mxu0 %vm269_vm1, %v204_v3  ;;  %v5926_v6 = vld [vmem:[%s5915_s22 + $0xc8] sm:$0xff]  ;;  %v5932_v8 = vld [vmem:[%s5915_s22 + $0xd8] sm:$0xff] }
  0x14   : > { %5386 = vmatprep.mubr.msk.f32.mxu1 %vm269_vm1, %v5919_v4  ;;  %5363 = vmatmul.mubr.msk.f32.vlgmr.msra.gmra.mxu0 %vm269_vm1, %v205_v5  ;;  %v5950_v11 = vld [vmem:[%s5915_s22 + $0x20] sm:$0xff]  ;;  %v5960_v13 = vld [vmem:[%s5915_s22 + $0x30] sm:$0xff]  ;;  %v5978_v15 = vld [vmem:[%s5915_s22 + $0x38] sm:$0xff] }
  0x15   : > { %5387 = vmatmul.mubr.msk.f32.vlgmr.msra.gmra.mxu1 %vm269_vm1, %v5926_v6  ;;  %5461 = vmatpush3.msk.msra.mxu0 %vm366_vm0, %v4630_v2  ;;  %v5953_v12 = vld [vmem:[%s5915_s22 + $0xe0] sm:$0xff]  ;;  %v5963_v14 = vld [vmem:[%s5915_s22 + $0xf0] sm:$0xff]  ;;  %v5981_v16 = vld [vmem:[%s5915_s22 + $0xf8] sm:$0xff] }
  0x16   : > { %5411 = vmatpush3.msk.msra.mxu1 %vm366_vm0, %v4596_v1  ;;  %5365 = vmatprep.mubr.msk.f32.mxu0 %vm269_vm1, %v5929_v7  ;;  %v5984_v17 = vld [vmem:[%s5915_s22 + $0x48] sm:$0xff]  ;;  %v5998_v19 = vld [vmem:[%s5915_s22 + $0x50] sm:$0xff]  ;;  %v6004_v21 = vld [vmem:[%s5915_s22 + $0x60] sm:$0xff] }
  0x17   : > { %5389 = vmatprep.mubr.msk.f32.mxu1 %vm269_vm1, %v5932_v8  ;;  %5510 = vmatprep.subr.msk.mxu1 %vm366_vm0, %v5940_v9  ;;  %v5987_v18 = vld [vmem:[%s5915_s22 + $0x108] sm:$0xff]  ;;  %v6001_v20 = vld [vmem:[%s5915_s22 + $0x110] sm:$0xff]  ;;  %v6007_v22 = vld [vmem:[%s5915_s22 + $0x120] sm:$0xff] }
  0x18   : > { %5560 = vmatprep.subr.msk.mxu0 %vm366_vm0, %v5945_v10  ;;  %5366 = vmatmul.mubr.msk.f32.gmra.mxu0 %vm269_vm1, %v5950_v11  ;;  %v6018_v23 = vld [vmem:[%s5915_s22 + $0x68] sm:$0xff]  ;;  %v6024_v25 = vld [vmem:[%s5915_s22 + $0x78] sm:$0xff]  ;;  %v6038_v27 = vld [vmem:[%s5915_s22 + $0x80] sm:$0xff] }
  0x19   : > { %5390 = vmatmul.mubr.msk.f32.gmra.mxu1 %vm269_vm1, %v5953_v12  ;;  %5368 = vmatprep.mubr.msk.f32.mxu0 %vm269_vm1, %v5960_v13  ;;  %v6021_v24 = vld [vmem:[%s5915_s22 + $0x128] sm:$0xff]  ;;  %v6027_v26 = vld [vmem:[%s5915_s22 + $0x138] sm:$0xff]  ;;  %v6041_v28 = vld [vmem:[%s5915_s22 + $0x140] sm:$0xff] }
  0x1a   : > { %5392 = vmatprep.mubr.msk.f32.mxu1 %vm269_vm1, %v5963_v14  ;;  %v6044_v29 = vld [vmem:[%s5915_s22 + $0x90] sm:$0xff]  ;;  %v6058_v31 = vld [vmem:[%s5915_s22 + $0x98] sm:$0xff]  ;;  %v6064_v33 = vld [vmem:[%s5915_s22 + $0xa8] sm:$0xff] }
  0x1b   : > { %v6047_v30 = vld [vmem:[%s5915_s22 + $0x150] sm:$0xff]  ;;  %v6061_v32 = vld [vmem:[%s5915_s22 + $0x158] sm:$0xff]  ;;  %v6067_v34 = vld [vmem:[%s5915_s22 + $0x168] sm:$0xff] }
  0x1c   : > { %5369 = vmatmul.mubr.msk.f32.gmra.mxu0 %vm269_vm1, %v5978_v15  ;;  %v6078_v35 = vld [vmem:[%s5915_s22 + $0xb0] sm:$0xff]  ;;  %v659_v37 = vld [vmem:[%s5915_s22 + $0x1] sm:$0xff]  ;;  %v6094_v41 = vld [vmem:[%s5915_s22 + $0x19] sm:$0xff] }
  0x1d   : > { %5393 = vmatmul.mubr.msk.f32.gmra.mxu1 %vm269_vm1, %v5981_v16  ;;  %5371 = vmatprep.mubr.msk.f32.mxu0 %vm269_vm1, %v5984_v17  ;;  %v6081_v36 = vld [vmem:[%s5915_s22 + $0x170] sm:$0xff]  ;;  %v1113_v38 = vld [vmem:[%s5915_s22 + $0x2] sm:$0xff]  ;;  %v6097_v42 = vld [vmem:[%s5915_s22 + $0x1a] sm:$0xff] }
  0x1e   : > { %5395 = vmatprep.mubr.msk.f32.mxu1 %vm269_vm1, %v5987_v18  ;;  %7460 = vst [vmem:[#allocation3_spill] sm:$0xff] %v6081_v36  ;;  %v660_v39 = vld [vmem:[%s5915_s22 + $0x9] sm:$0xff]  ;;  %7461 = vst [vmem:[#allocation4_spill] sm:$0xff] %v6097_v42  ;;  %v6116_v45 = vld [vmem:[%s5915_s22 + $0x21] sm:$0xff] }
  0x1f   : > { %v1114_v40 = vld [vmem:[%s5915_s22 + $0xa] sm:$0xff]  ;;  %v6119_v46 = vld [vmem:[%s5915_s22 + $0x22] sm:$0xff]  ;;  %v6129_v48 = vld [vmem:[%s5915_s22 + $0x32] sm:$0xff] }
  0x20   : > { %5372 = vmatmul.mubr.msk.f32.gmra.mxu0 %vm269_vm1, %v5998_v19  ;;  %7462 = vst [vmem:[#allocation5_spill] sm:$0xff] %v6119_v46  ;;  %v6126_v47 = vld [vmem:[%s5915_s22 + $0x31] sm:$0xff]  ;;  %7463 = vst [vmem:[#allocation6_spill] sm:$0xff] %v6129_v48  ;;  %v6144_v49 = vld [vmem:[%s5915_s22 + $0x39] sm:$0xff] }
  0x21   : > { %5396 = vmatmul.mubr.msk.f32.gmra.mxu1 %vm269_vm1, %v6001_v20  ;;  %5374 = vmatprep.mubr.msk.f32.mxu0 %vm269_vm1, %v6004_v21  ;;  %v6147_v50 = vld [vmem:[%s5915_s22 + $0x3a] sm:$0xff]  ;;  %v6150_v51 = vld [vmem:[%s5915_s22 + $0x49] sm:$0xff]  ;;  %v6164_v53 = vld [vmem:[%s5915_s22 + $0x51] sm:$0xff] }
  0x22   : > { %5398 = vmatprep.mubr.msk.f32.mxu1 %vm269_vm1, %v6007_v22  ;;  %7464 = vst [vmem:[#allocation7_spill] sm:$0xff] %v6147_v50  ;;  %v6153_v52 = vld [vmem:[%s5915_s22 + $0x4a] sm:$0xff]  ;;  %v6167_v54 = vld [vmem:[%s5915_s22 + $0x52] sm:$0xff]  ;;  %v6170_v55 = vld [vmem:[%s5915_s22 + $0x61] sm:$0xff] }
  0x23   : > { %7465 = vst [vmem:[#allocation8_spill] sm:$0xff] %v6153_v52  ;;  %7466 = vst [vmem:[#allocation9_spill] sm:$0xff] %v6167_v54  ;;  %v6173_v56 = vld [vmem:[%s5915_s22 + $0x62] sm:$0xff]  ;;  %v6187_v58 = vld [vmem:[%s5915_s22 + $0x6a] sm:$0xff] }
  0x24   : > { %5375 = vmatmul.mubr.msk.f32.gmra.mxu0 %vm269_vm1, %v6018_v23  ;;  %7467 = vst [vmem:[#allocation10_spill] sm:$0xff] %v6173_v56  ;;  %v6184_v57 = vld [vmem:[%s5915_s22 + $0x69] sm:$0xff]  ;;  %7468 = vst [vmem:[#allocation11_spill] sm:$0xff] %v6187_v58  ;;  %v6190_v59 = vld [vmem:[%s5915_s22 + $0x79] sm:$0xff] }
  0x25   : > { %5399 = vmatmul.mubr.msk.f32.gmra.mxu1 %vm269_vm1, %v6021_v24  ;;  %5377 = vmatprep.mubr.msk.f32.mxu0 %vm269_vm1, %v6024_v25  ;;  %v6193_v60 = vld [vmem:[%s5915_s22 + $0x7a] sm:$0xff]  ;;  %v6207_v62 = vld [vmem:[%s5915_s22 + $0x82] sm:$0xff]  ;;  %v6210_v63 = vld [vmem:[%s5915_s22 + $0x91] sm:$0xff] }
  0x26   : > { %5401 = vmatprep.mubr.msk.f32.mxu1 %vm269_vm1, %v6027_v26  ;;  %7469 = vst [vmem:[#allocation12_spill] sm:$0xff] %v6193_v60  ;;  %v6204_v61 = vld [vmem:[%s5915_s22 + $0x81] sm:$0xff]  ;;  %7470 = vst [vmem:[#allocation13_spill] sm:$0xff] %v6207_v62  ;;  %v6213_v0 = vld [vmem:[%s5915_s22 + $0x92] sm:$0xff] }
  0x27   : > { %7471 = vst [vmem:[#allocation14_spill] sm:$0xff] %v6213_v0  ;;  %v6224_v1 = vld [vmem:[%s5915_s22 + $0x99] sm:$0xff]  ;;  %v6230_v3 = vld [vmem:[%s5915_s22 + $0xa9] sm:$0xff] }
  0x28   : > { %5378 = vmatmul.mubr.msk.f32.gmra.mxu0 %vm269_vm1, %v6038_v27  ;;  %v6227_v2 = vld [vmem:[%s5915_s22 + $0x9a] sm:$0xff]  ;;  %v6233_v5 = vld [vmem:[%s5915_s22 + $0xaa] sm:$0xff] }
  0x29   : > { %5402 = vmatmul.mubr.msk.f32.gmra.mxu1 %vm269_vm1, %v6041_v28  ;;  %5380 = vmatprep.mubr.msk.f32.mxu0 %vm269_vm1, %v6044_v29  ;;  %7472 = vst [vmem:[#allocation15_spill] sm:$0xff] %v6227_v2  ;;  %7473 = vst [vmem:[#allocation16_spill] sm:$0xff] %v6233_v5 }
  0x2a   : > { %5404 = vmatprep.mubr.msk.f32.mxu1 %vm269_vm1, %v6047_v30 }
  0x2c   : > { %5381 = vmatmul.mubr.msk.f32.gmra.mxu0 %vm269_vm1, %v6058_v31 }
  0x2d   : > { %5405 = vmatmul.mubr.msk.f32.gmra.mxu1 %vm269_vm1, %v6061_v32  ;;  %5383 = vmatprep.mubr.msk.f32.mxu0 %vm269_vm1, %v6064_v33 }
  0x2e   : > { %5407 = vmatprep.mubr.msk.f32.mxu1 %vm269_vm1, %v6067_v34 }
  0x30   : > { %5384 = vmatmul.mubr.msk.f32.gmra.mxu0 %vm269_vm1, %v6078_v35 }
  0x31   : > { %5408 = vmatmul.mubr.msk.f32.gmra.mxu1 %vm269_vm1, %v6081_v36  ;;  %5462 = vmatprep.mubr.msk.f32.mxu0 %vm269_vm1, %v1113_v38  ;;  %v6253_v38 = vld [vmem:[%s5915_s22 + $0xc2] sm:$0xff]  ;;  %v6393_v36 = vld [vmem:[%s5915_s22 + $0x16a] sm:$0xff] }
  0x32   : > { %5412 = vmatprep.mubr.msk.f32.mxu1 %vm269_vm1, %v659_v37  ;;  %v6250_v37 = vld [vmem:[%s5915_s22 + $0xc1] sm:$0xff]  ;;  %7475 = vst [vmem:[#allocation18_spill] sm:$0xff] %v6253_v38  ;;  %7495 = vst [vmem:[#allocation38_spill] sm:$0xff] %v6393_v36 }
  0x34   : > { %5463 = vmatmul.mubr.msk.f32.vlgmr.msra.gmra.mxu0 %vm269_vm1, %v1114_v40  ;;  %v6267_v40 = vld [vmem:[%s5915_s22 + $0xca] sm:$0xff] }
  0x35   : > { %5413 = vmatmul.mubr.msk.f32.vlgmr.msra.gmra.mxu1 %vm269_vm1, %v660_v39  ;;  %5561 = vmatpush3.msk.msra.mxu0 %vm366_vm0, %v5945_v10  ;;  %v6247_v10 = vld [vmem:[%s5915_s22 + $0xb2] sm:$0xff]  ;;  %v6264_v39 = vld [vmem:[%s5915_s22 + $0xc9] sm:$0xff]  ;;  %7476 = vst [vmem:[#allocation19_spill] sm:$0xff] %v6267_v40 }
  0x36   : > { %5511 = vmatpush3.msk.msra.mxu1 %vm366_vm0, %v5940_v9  ;;  %5415 = vmatprep.mubr.msk.f32.mxu1 %vm269_vm1, %v6094_v41  ;;  %v6244_v9 = vld [vmem:[%s5915_s22 + $0xb1] sm:$0xff]  ;;  %7474 = vst [vmem:[#allocation17_spill] sm:$0xff] %v6247_v10 }
  0x37   : > { %5465 = vmatprep.mubr.msk.f32.mxu0 %vm269_vm1, %v6097_v42  ;;  %5610 = vmatprep.subr.msk.mxu1 %vm366_vm0, %v6104_v43  ;;  %v6390_v42 = vld [vmem:[%s5915_s22 + $0x169] sm:$0xff] }
  0x38   : > { %5660 = vmatprep.subr.msk.mxu0 %vm366_vm0, %v6109_v44  ;;  %5466 = vmatmul.mubr.msk.f32.gmra.mxu0 %vm269_vm1, %v6119_v46  ;;  %v6373_v46 = vld [vmem:[%s5915_s22 + $0x152] sm:$0xff] }
  0x39   : > { %5416 = vmatmul.mubr.msk.f32.gmra.mxu1 %vm269_vm1, %v6116_v45  ;;  %5468 = vmatprep.mubr.msk.f32.mxu0 %vm269_vm1, %v6129_v48  ;;  %v6370_v48 = vld [vmem:[%s5915_s22 + $0x151] sm:$0xff]  ;;  %7492 = vst [vmem:[#allocation35_spill] sm:$0xff] %v6373_v46 }
  0x3a   : > { %5418 = vmatprep.mubr.msk.f32.mxu1 %vm269_vm1, %v6126_v47  ;;  %7491 = vst [vmem:[#allocation34_spill] sm:$0xff] %v6370_v48 }
  0x3c   : > { %5469 = vmatmul.mubr.msk.f32.gmra.mxu0 %vm269_vm1, %v6147_v50  ;;  %v6353_v50 = vld [vmem:[%s5915_s22 + $0x13a] sm:$0xff] }
  0x3d   : > { %5419 = vmatmul.mubr.msk.f32.gmra.mxu1 %vm269_vm1, %v6144_v49  ;;  %5471 = vmatprep.mubr.msk.f32.mxu0 %vm269_vm1, %v6153_v52  ;;  %v6350_v52 = vld [vmem:[%s5915_s22 + $0x139] sm:$0xff]  ;;  %7488 = vst [vmem:[#allocation31_spill] sm:$0xff] %v6353_v50 }
  0x3e   : > { %5421 = vmatprep.mubr.msk.f32.mxu1 %vm269_vm1, %v6150_v51  ;;  %7487 = vst [vmem:[#allocation30_spill] sm:$0xff] %v6350_v52 }
  0x40   : > { %5472 = vmatmul.mubr.msk.f32.gmra.mxu0 %vm269_vm1, %v6167_v54  ;;  %v6333_v54 = vld [vmem:[%s5915_s22 + $0x122] sm:$0xff] }
  0x41   : > { %5422 = vmatmul.mubr.msk.f32.gmra.mxu1 %vm269_vm1, %v6164_v53  ;;  %5474 = vmatprep.mubr.msk.f32.mxu0 %vm269_vm1, %v6173_v56  ;;  %v6330_v56 = vld [vmem:[%s5915_s22 + $0x121] sm:$0xff]  ;;  %7484 = vst [vmem:[#allocation27_spill] sm:$0xff] %v6333_v54 }
  0x42   : > { %5424 = vmatprep.mubr.msk.f32.mxu1 %vm269_vm1, %v6170_v55  ;;  %7483 = vst [vmem:[#allocation26_spill] sm:$0xff] %v6330_v56 }
  0x44   : > { %5475 = vmatmul.mubr.msk.f32.gmra.mxu0 %vm269_vm1, %v6187_v58  ;;  %v6313_v58 = vld [vmem:[%s5915_s22 + $0x10a] sm:$0xff] }
  0x45   : > { %5425 = vmatmul.mubr.msk.f32.gmra.mxu1 %vm269_vm1, %v6184_v57  ;;  %5477 = vmatprep.mubr.msk.f32.mxu0 %vm269_vm1, %v6193_v60  ;;  %v6310_v60 = vld [vmem:[%s5915_s22 + $0x109] sm:$0xff]  ;;  %7481 = vst [vmem:[#allocation24_spill] sm:$0xff] %v6313_v58 }
  0x46   : > { %5427 = vmatprep.mubr.msk.f32.mxu1 %vm269_vm1, %v6190_v59 }
  0x48   : > { %5478 = vmatmul.mubr.msk.f32.gmra.mxu0 %vm269_vm1, %v6207_v62  ;;  %v6293_v62 = vld [vmem:[%s5915_s22 + $0xf2] sm:$0xff] }
  0x49   : > { %5428 = vmatmul.mubr.msk.f32.gmra.mxu1 %vm269_vm1, %v6204_v61  ;;  %5480 = vmatprep.mubr.msk.f32.mxu0 %vm269_vm1, %v6213_v0  ;;  %v6290_v0 = vld [vmem:[%s5915_s22 + $0xf1] sm:$0xff]  ;;  %7479 = vst [vmem:[#allocation22_spill] sm:$0xff] %v6293_v62 }
  0x4a   : > { %5430 = vmatprep.mubr.msk.f32.mxu1 %vm269_vm1, %v6210_v63 }
  0x4c   : > { %5481 = vmatmul.mubr.msk.f32.gmra.mxu0 %vm269_vm1, %v6227_v2  ;;  %v6273_v2 = vld [vmem:[%s5915_s22 + $0xda] sm:$0xff] }
  0x4d   : > { %5431 = vmatmul.mubr.msk.f32.gmra.mxu1 %vm269_vm1, %v6224_v1  ;;  %5483 = vmatprep.mubr.msk.f32.mxu0 %vm269_vm1, %v6233_v5  ;;  %v6270_v5 = vld [vmem:[%s5915_s22 + $0xd9] sm:$0xff]  ;;  %7477 = vst [vmem:[#allocation20_spill] sm:$0xff] %v6273_v2 }
  0x4e   : > { %5433 = vmatprep.mubr.msk.f32.mxu1 %vm269_vm1, %v6230_v3 }
  0x50   : > { %5484 = vmatmul.mubr.msk.f32.gmra.mxu0 %vm269_vm1, %v6247_v10  ;;  %v6287_v10 = vld [vmem:[%s5915_s22 + $0xe2] sm:$0xff] }
  0x51   : > { %5434 = vmatmul.mubr.msk.f32.gmra.mxu1 %vm269_vm1, %v6244_v9  ;;  %5486 = vmatprep.mubr.msk.f32.mxu0 %vm269_vm1, %v6253_v38  ;;  %v6284_v38 = vld [vmem:[%s5915_s22 + $0xe1] sm:$0xff]  ;;  %7478 = vst [vmem:[#allocation21_spill] sm:$0xff] %v6287_v10 }
  0x52   : > { %5436 = vmatprep.mubr.msk.f32.mxu1 %vm269_vm1, %v6250_v37 }
  0x54   : > { %5487 = vmatmul.mubr.msk.f32.gmra.mxu0 %vm269_vm1, %v6267_v40  ;;  %v6307_v40 = vld [vmem:[%s5915_s22 + $0xfa] sm:$0xff] }
  0x55   : > { %5437 = vmatmul.mubr.msk.f32.gmra.mxu1 %vm269_vm1, %v6264_v39  ;;  %5489 = vmatprep.mubr.msk.f32.mxu0 %vm269_vm1, %v6273_v2  ;;  %v6304_v2 = vld [vmem:[%s5915_s22 + $0xf9] sm:$0xff]  ;;  %7480 = vst [vmem:[#allocation23_spill] sm:$0xff] %v6307_v40 }
  0x56   : > { %5439 = vmatprep.mubr.msk.f32.mxu1 %vm269_vm1, %v6270_v5 }
  0x58   : > { %5490 = vmatmul.mubr.msk.f32.gmra.mxu0 %vm269_vm1, %v6287_v10  ;;  %v6327_v10 = vld [vmem:[%s5915_s22 + $0x112] sm:$0xff] }
  0x59   : > { %5440 = vmatmul.mubr.msk.f32.gmra.mxu1 %vm269_vm1, %v6284_v38  ;;  %5492 = vmatprep.mubr.msk.f32.mxu0 %vm269_vm1, %v6293_v62  ;;  %v6324_v62 = vld [vmem:[%s5915_s22 + $0x111] sm:$0xff]  ;;  %7482 = vst [vmem:[#allocation25_spill] sm:$0xff] %v6327_v10 }
  0x5a   : > { %5442 = vmatprep.mubr.msk.f32.mxu1 %vm269_vm1, %v6290_v0 }
  0x5c   : > { %5493 = vmatmul.mubr.msk.f32.gmra.mxu0 %vm269_vm1, %v6307_v40  ;;  %v6347_v40 = vld [vmem:[%s5915_s22 + $0x12a] sm:$0xff] }
  0x5d   : > { %5443 = vmatmul.mubr.msk.f32.gmra.mxu1 %vm269_vm1, %v6304_v2  ;;  %5495 = vmatprep.mubr.msk.f32.mxu0 %vm269_vm1, %v6313_v58  ;;  %v6344_v58 = vld [vmem:[%s5915_s22 + $0x129] sm:$0xff]  ;;  %7486 = vst [vmem:[#allocation29_spill] sm:$0xff] %v6347_v40 }
  0x5e   : > { %5445 = vmatprep.mubr.msk.f32.mxu1 %vm269_vm1, %v6310_v60  ;;  %7485 = vst [vmem:[#allocation28_spill] sm:$0xff] %v6344_v58 }
  0x60   : > { %5496 = vmatmul.mubr.msk.f32.gmra.mxu0 %vm269_vm1, %v6327_v10  ;;  %v6367_v10 = vld [vmem:[%s5915_s22 + $0x142] sm:$0xff] }
  0x61   : > { %5446 = vmatmul.mubr.msk.f32.gmra.mxu1 %vm269_vm1, %v6324_v62  ;;  %5498 = vmatprep.mubr.msk.f32.mxu0 %vm269_vm1, %v6333_v54  ;;  %v6364_v54 = vld [vmem:[%s5915_s22 + $0x141] sm:$0xff]  ;;  %7490 = vst [vmem:[#allocation33_spill] sm:$0xff] %v6367_v10 }
  0x62   : > { %5448 = vmatprep.mubr.msk.f32.mxu1 %vm269_vm1, %v6330_v56  ;;  %7489 = vst [vmem:[#allocation32_spill] sm:$0xff] %v6364_v54 }
  0x64   : > { %5499 = vmatmul.mubr.msk.f32.gmra.mxu0 %vm269_vm1, %v6347_v40  ;;  %v6387_v40 = vld [vmem:[%s5915_s22 + $0x15a] sm:$0xff] }
  0x65   : > { %5449 = vmatmul.mubr.msk.f32.gmra.mxu1 %vm269_vm1, %v6344_v58  ;;  %5501 = vmatprep.mubr.msk.f32.mxu0 %vm269_vm1, %v6353_v50  ;;  %v6384_v50 = vld [vmem:[%s5915_s22 + $0x159] sm:$0xff]  ;;  %7494 = vst [vmem:[#allocation37_spill] sm:$0xff] %v6387_v40 }
  0x66   : > { %5451 = vmatprep.mubr.msk.f32.mxu1 %vm269_vm1, %v6350_v52  ;;  %7493 = vst [vmem:[#allocation36_spill] sm:$0xff] %v6384_v50 }
  0x68   : > { %5502 = vmatmul.mubr.msk.f32.gmra.mxu0 %vm269_vm1, %v6367_v10  ;;  %v6407_v10 = vld [vmem:[%s5915_s22 + $0x172] sm:$0xff] }
  0x69   : > { %5452 = vmatmul.mubr.msk.f32.gmra.mxu1 %vm269_vm1, %v6364_v54  ;;  %5504 = vmatprep.mubr.msk.f32.mxu0 %vm269_vm1, %v6373_v46  ;;  %v6404_v46 = vld [vmem:[%s5915_s22 + $0x171] sm:$0xff]  ;;  %7496 = vst [vmem:[#allocation39_spill] sm:$0xff] %v6407_v10 }
  0x6a   : > { %5454 = vmatprep.mubr.msk.f32.mxu1 %vm269_vm1, %v6370_v48 }
  0x6c   : > { %5505 = vmatmul.mubr.msk.f32.gmra.mxu0 %vm269_vm1, %v6387_v40 }
  0x6d   : > { %5455 = vmatmul.mubr.msk.f32.gmra.mxu1 %vm269_vm1, %v6384_v50  ;;  %5507 = vmatprep.mubr.msk.f32.mxu0 %vm269_vm1, %v6393_v36  ;;  %v6424_v36 = vld [vmem:[%s7391_s1 + $0x1c] sm:$0xf] }
  0x6e   : > { %5457 = vmatprep.mubr.msk.f32.mxu1 %vm269_vm1, %v6390_v42 }
  0x70   : > { %5508 = vmatmul.mubr.msk.f32.gmra.mxu0 %vm269_vm1, %v6407_v10  ;;  %v6429_v10 = vld [vmem:[%s7391_s1 + $0x20] sm:$0xf] }
  0x71   : > { %5458 = vmatmul.mubr.msk.f32.gmra.mxu1 %vm269_vm1, %v6404_v46  ;;  %5562 = vmatprep.mubr.msk.f32.mxu0 %vm269_vm1, %v6094_v41  ;;  %v7498_v41 = vld [vmem:[#allocation3_spill] sm:$0xff] }
  0x72   : > { %5512 = vmatprep.mubr.msk.f32.mxu1 %vm269_vm1, %v5929_v7  ;;  %v6548_v7 = vld [vmem:[%s5915_s22 + $0x180] sm:$0xff] }
  0x74   : > { %5563 = vmatmul.mubr.msk.f32.vlgmr.msra.gmra.mxu0 %vm269_vm1, %v6116_v45  ;;  %v7501_v45 = vld [vmem:[#allocation5_spill] sm:$0xff] }
  0x75   : > { %5513 = vmatmul.mubr.msk.f32.vlgmr.msra.gmra.mxu1 %vm269_vm1, %v5950_v11  ;;  %5661 = vmatpush3.msk.msra.mxu0 %vm366_vm0, %v6109_v44  ;;  %v6551_v11 = vld [vmem:[%s5915_s22 + $0x181] sm:$0xff]  ;;  %v6565_v44 = vld [vmem:[%s5915_s22 + $0x189] sm:$0xff] }
  0x76   : > { %5611 = vmatpush3.msk.msra.mxu1 %vm366_vm0, %v6104_v43  ;;  %5515 = vmatprep.mubr.msk.f32.mxu1 %vm269_vm1, %v5960_v13  ;;  %7497 = vst [vmem:[#allocation40_spill] sm:$0xff] %v6551_v11  ;;  %v6562_v43 = vld [vmem:[%s5915_s22 + $0x188] sm:$0xff]  ;;  %7499 = vst [vmem:[#allocation3_spill] sm:$0xff] %v6565_v44 }
  0x77   : > { %5565 = vmatprep.mubr.msk.f32.mxu0 %vm269_vm1, %v6126_v47  ;;  %5710 = vmatprep.subr.msk.mxu1 %vm366_vm0, %v6424_v36 }
  0x78   : > { %5760 = vmatprep.subr.msk.mxu0 %vm366_vm0, %v6429_v10  ;;  %5566 = vmatmul.mubr.msk.f32.gmra.mxu0 %vm269_vm1, %v6144_v49 }
  0x79   : > { %5516 = vmatmul.mubr.msk.f32.gmra.mxu1 %vm269_vm1, %v5978_v15  ;;  %5568 = vmatprep.mubr.msk.f32.mxu0 %vm269_vm1, %v6150_v51 }
  0x7a   : > { %5518 = vmatprep.mubr.msk.f32.mxu1 %vm269_vm1, %v5984_v17 }
  0x7c   : > { %5569 = vmatmul.mubr.msk.f32.gmra.mxu0 %vm269_vm1, %v6164_v53 }
  0x7d   : > { %5519 = vmatmul.mubr.msk.f32.gmra.mxu1 %vm269_vm1, %v5998_v19  ;;  %5571 = vmatprep.mubr.msk.f32.mxu0 %vm269_vm1, %v6170_v55 }
  0x7e   : > { %5521 = vmatprep.mubr.msk.f32.mxu1 %vm269_vm1, %v6004_v21 }
  0x80   : > { %5572 = vmatmul.mubr.msk.f32.gmra.mxu0 %vm269_vm1, %v6184_v57 }
  0x81   : > { %5522 = vmatmul.mubr.msk.f32.gmra.mxu1 %vm269_vm1, %v6018_v23  ;;  %5574 = vmatprep.mubr.msk.f32.mxu0 %vm269_vm1, %v6190_v59 }
  0x82   : > { %5524 = vmatprep.mubr.msk.f32.mxu1 %vm269_vm1, %v6024_v25 }
  0x84   : > { %5575 = vmatmul.mubr.msk.f32.gmra.mxu0 %vm269_vm1, %v6204_v61 }
  0x85   : > { %5525 = vmatmul.mubr.msk.f32.gmra.mxu1 %vm269_vm1, %v6038_v27  ;;  %5577 = vmatprep.mubr.msk.f32.mxu0 %vm269_vm1, %v6210_v63 }
  0x86   : > { %5527 = vmatprep.mubr.msk.f32.mxu1 %vm269_vm1, %v6044_v29 }
  0x88   : > { %5578 = vmatmul.mubr.msk.f32.gmra.mxu0 %vm269_vm1, %v6224_v1 }
  0x89   : > { %5528 = vmatmul.mubr.msk.f32.gmra.mxu1 %vm269_vm1, %v6058_v31  ;;  %5580 = vmatprep.mubr.msk.f32.mxu0 %vm269_vm1, %v6230_v3 }
  0x8a   : > { %5530 = vmatprep.mubr.msk.f32.mxu1 %vm269_vm1, %v6064_v33 }
  0x8c   : > { %5581 = vmatmul.mubr.msk.f32.gmra.mxu0 %vm269_vm1, %v6244_v9 }
  0x8d   : > { %5531 = vmatmul.mubr.msk.f32.gmra.mxu1 %vm269_vm1, %v6078_v35  ;;  %5583 = vmatprep.mubr.msk.f32.mxu0 %vm269_vm1, %v6250_v37 }
  0x8e   : > { %5533 = vmatprep.mubr.msk.f32.mxu1 %vm269_vm1, %v5919_v4 }
  0x90   : > { %5584 = vmatmul.mubr.msk.f32.gmra.mxu0 %vm269_vm1, %v6264_v39 }
  0x91   : > { %5534 = vmatmul.mubr.msk.f32.gmra.mxu1 %vm269_vm1, %v5926_v6  ;;  %5586 = vmatprep.mubr.msk.f32.mxu0 %vm269_vm1, %v6270_v5 }
  0x92   : > { %5536 = vmatprep.mubr.msk.f32.mxu1 %vm269_vm1, %v5932_v8 }
  0x94   : > { %5587 = vmatmul.mubr.msk.f32.gmra.mxu0 %vm269_vm1, %v6284_v38 }
  0x95   : > { %5537 = vmatmul.mubr.msk.f32.gmra.mxu1 %vm269_vm1, %v5953_v12  ;;  %5589 = vmatprep.mubr.msk.f32.mxu0 %vm269_vm1, %v6290_v0 }
  0x96   : > { %5539 = vmatprep.mubr.msk.f32.mxu1 %vm269_vm1, %v5963_v14 }
  0x98   : > { %5590 = vmatmul.mubr.msk.f32.gmra.mxu0 %vm269_vm1, %v6304_v2 }
  0x99   : > { %5540 = vmatmul.mubr.msk.f32.gmra.mxu1 %vm269_vm1, %v5981_v16  ;;  %5592 = vmatprep.mubr.msk.f32.mxu0 %vm269_vm1, %v6310_v60 }
  0x9a   : > { %5542 = vmatprep.mubr.msk.f32.mxu1 %vm269_vm1, %v5987_v18 }
  0x9c   : > { %5593 = vmatmul.mubr.msk.f32.gmra.mxu0 %vm269_vm1, %v6324_v62 }
  0x9d   : > { %5543 = vmatmul.mubr.msk.f32.gmra.mxu1 %vm269_vm1, %v6001_v20  ;;  %5595 = vmatprep.mubr.msk.f32.mxu0 %vm269_vm1, %v6330_v56 }
  0x9e   : > { %5545 = vmatprep.mubr.msk.f32.mxu1 %vm269_vm1, %v6007_v22 }
  0xa0   : > { %5596 = vmatmul.mubr.msk.f32.gmra.mxu0 %vm269_vm1, %v6344_v58 }
  0xa1   : > { %5546 = vmatmul.mubr.msk.f32.gmra.mxu1 %vm269_vm1, %v6021_v24  ;;  %5598 = vmatprep.mubr.msk.f32.mxu0 %vm269_vm1, %v6350_v52  ;;  %v7524_v52 = vld [vmem:[#allocation25_spill] sm:$0xff] }
  0xa2   : > { %5548 = vmatprep.mubr.msk.f32.mxu1 %vm269_vm1, %v6027_v26 }
  0xa4   : > { %5599 = vmatmul.mubr.msk.f32.gmra.mxu0 %vm269_vm1, %v6364_v54 }
  0xa5   : > { %5549 = vmatmul.mubr.msk.f32.gmra.mxu1 %vm269_vm1, %v6041_v28  ;;  %5601 = vmatprep.mubr.msk.f32.mxu0 %vm269_vm1, %v6370_v48 }
  0xa6   : > { %5551 = vmatprep.mubr.msk.f32.mxu1 %vm269_vm1, %v6047_v30 }
  0xa8   : > { %5602 = vmatmul.mubr.msk.f32.gmra.mxu0 %vm269_vm1, %v6384_v50 }
  0xa9   : > { %5552 = vmatmul.mubr.msk.f32.gmra.mxu1 %vm269_vm1, %v6061_v32  ;;  %5604 = vmatprep.mubr.msk.f32.mxu0 %vm269_vm1, %v6390_v42  ;;  %v7500_v42 = vld [vmem:[#allocation4_spill] sm:$0xff] }
  0xaa   : > { %5554 = vmatprep.mubr.msk.f32.mxu1 %vm269_vm1, %v6067_v34 }
  0xac   : > { %5605 = vmatmul.mubr.msk.f32.gmra.mxu0 %vm269_vm1, %v6404_v46  ;;  %v7502_v46 = vld [vmem:[#allocation6_spill] sm:$0xff] }
  0xad   : > { %5555 = vmatmul.mubr.msk.f32.gmra.mxu1 %vm269_vm1, %v7498_v41  ;;  %5607 = vmatprep.mubr.msk.f32.mxu0 %vm269_vm1, %v6551_v11  ;;  %v7520_v11 = vld [vmem:[#allocation23_spill] sm:$0xff] }
  0xae   : > { %5557 = vmatprep.mubr.msk.f32.mxu1 %vm269_vm1, %v6548_v7 }
  0xb0   : > { %5608 = vmatmul.mubr.msk.f32.gmra.mxu0 %vm269_vm1, %v6565_v44 }
  0xb1   : > { %5558 = vmatmul.mubr.msk.f32.gmra.mxu1 %vm269_vm1, %v6562_v43  ;;  %5662 = vmatprep.mubr.msk.f32.mxu0 %vm269_vm1, %v5960_v13  ;;  %v7504_v13 = vld [vmem:[#allocation8_spill] sm:$0xff] }
  0xb2   : > { %5612 = vmatprep.mubr.msk.f32.mxu1 %vm269_vm1, %v7500_v42  ;;  %v7503_v42 = vld [vmem:[#allocation7_spill] sm:$0xff] }
  0xb4   : > { %5663 = vmatmul.mubr.msk.f32.vlgmr.msra.gmra.mxu0 %vm269_vm1, %v5978_v15  ;;  %v7505_v15 = vld [vmem:[#allocation9_spill] sm:$0xff] }
  0xb5   : > { %5613 = vmatmul.mubr.msk.f32.vlgmr.msra.gmra.mxu1 %vm269_vm1, %v7501_v45  ;;  %5761 = vmatpush3.msk.msra.mxu0 %vm366_vm0, %v6429_v10  ;;  %v7517_v10 = vld [vmem:[#allocation21_spill] sm:$0xff] }
  0xb6   : > { %5711 = vmatpush3.msk.msra.mxu1 %vm366_vm0, %v6424_v36  ;;  %5615 = vmatprep.mubr.msk.f32.mxu1 %vm269_vm1, %v7502_v46  ;;  %v7506_v36 = vld [vmem:[#allocation10_spill] sm:$0xff] }
  0xb7   : > { %5665 = vmatprep.mubr.msk.f32.mxu0 %vm269_vm1, %v5984_v17  ;;  %v7507_v17 = vld [vmem:[#allocation11_spill] sm:$0xff] }
  0xb8   : > { %5666 = vmatmul.mubr.msk.f32.gmra.mxu0 %vm269_vm1, %v5998_v19  ;;  %v7508_v19 = vld [vmem:[#allocation12_spill] sm:$0xff] }
  0xb9   : > { %5616 = vmatmul.mubr.msk.f32.gmra.mxu1 %vm269_vm1, %v7503_v42  ;;  %5668 = vmatprep.mubr.msk.f32.mxu0 %vm269_vm1, %v6004_v21  ;;  %v7509_v21 = vld [vmem:[#allocation13_spill] sm:$0xff] }
  0xba   : > { %5618 = vmatprep.mubr.msk.f32.mxu1 %vm269_vm1, %v7504_v13 }
  0xbc   : > { %5669 = vmatmul.mubr.msk.f32.gmra.mxu0 %vm269_vm1, %v6018_v23  ;;  %v7510_v23 = vld [vmem:[#allocation14_spill] sm:$0xff] }
  0xbd   : > { %5619 = vmatmul.mubr.msk.f32.gmra.mxu1 %vm269_vm1, %v7505_v15  ;;  %5671 = vmatprep.mubr.msk.f32.mxu0 %vm269_vm1, %v6024_v25  ;;  %v7511_v25 = vld [vmem:[#allocation15_spill] sm:$0xff] }
  0xbe   : > { %5621 = vmatprep.mubr.msk.f32.mxu1 %vm269_vm1, %v7506_v36 }
  0xc0   : > { %5672 = vmatmul.mubr.msk.f32.gmra.mxu0 %vm269_vm1, %v6038_v27  ;;  %v7512_v27 = vld [vmem:[#allocation16_spill] sm:$0xff] }
  0xc1   : > { %5622 = vmatmul.mubr.msk.f32.gmra.mxu1 %vm269_vm1, %v7507_v17  ;;  %5674 = vmatprep.mubr.msk.f32.mxu0 %vm269_vm1, %v6044_v29  ;;  %v7513_v29 = vld [vmem:[#allocation17_spill] sm:$0xff] }
  0xc2   : > { %5624 = vmatprep.mubr.msk.f32.mxu1 %vm269_vm1, %v7508_v19 }
  0xc4   : > { %5675 = vmatmul.mubr.msk.f32.gmra.mxu0 %vm269_vm1, %v6058_v31  ;;  %v7514_v31 = vld [vmem:[#allocation18_spill] sm:$0xff] }
  0xc5   : > { %5625 = vmatmul.mubr.msk.f32.gmra.mxu1 %vm269_vm1, %v7509_v21  ;;  %5677 = vmatprep.mubr.msk.f32.mxu0 %vm269_vm1, %v6064_v33  ;;  %v7515_v33 = vld [vmem:[#allocation19_spill] sm:$0xff] }
  0xc6   : > { %5627 = vmatprep.mubr.msk.f32.mxu1 %vm269_vm1, %v7510_v23 }
  0xc8   : > { %5678 = vmatmul.mubr.msk.f32.gmra.mxu0 %vm269_vm1, %v6078_v35  ;;  %v7516_v35 = vld [vmem:[#allocation20_spill] sm:$0xff] }
  0xc9   : > { %5628 = vmatmul.mubr.msk.f32.gmra.mxu1 %vm269_vm1, %v7511_v25  ;;  %5680 = vmatprep.mubr.msk.f32.mxu0 %vm269_vm1, %v5919_v4 }
  0xca   : > { %5630 = vmatprep.mubr.msk.f32.mxu1 %vm269_vm1, %v7512_v27 }
  0xcc   : > { %5681 = vmatmul.mubr.msk.f32.gmra.mxu0 %vm269_vm1, %v5926_v6 }
  0xcd   : > { %5631 = vmatmul.mubr.msk.f32.gmra.mxu1 %vm269_vm1, %v7513_v29  ;;  %5683 = vmatprep.mubr.msk.f32.mxu0 %vm269_vm1, %v5932_v8  ;;  %v7518_v8 = vld [vmem:[#allocation22_spill] sm:$0xff] }
  0xce   : > { %5633 = vmatprep.mubr.msk.f32.mxu1 %vm269_vm1, %v7514_v31 }
  0xd0   : > { %5684 = vmatmul.mubr.msk.f32.gmra.mxu0 %vm269_vm1, %v5953_v12 }
  0xd1   : > { %5634 = vmatmul.mubr.msk.f32.gmra.mxu1 %vm269_vm1, %v7515_v33  ;;  %5686 = vmatprep.mubr.msk.f32.mxu0 %vm269_vm1, %v5963_v14 }
  0xd2   : > { %5636 = vmatprep.mubr.msk.f32.mxu1 %vm269_vm1, %v7516_v35 }
  0xd4   : > { %v6643_v4 = vpop.f32.mrf.mxu0  ;;  %5687 = vmatmul.mubr.msk.f32.gmra.mxu0 %vm269_vm1, %v5981_v16  ;;  %v7521_v16 = vld [vmem:[#allocation24_spill] sm:$0xff] }
  0xd5   : > { %v6645_v6 = vpop.f32.mrf.mxu1  ;;  %5637 = vmatmul.mubr.msk.f32.gmra.mxu1 %vm269_vm1, %v7517_v10  ;;  %5689 = vmatprep.mubr.msk.f32.mxu0 %vm269_vm1, %v5987_v18 }
  0xd6   : > { %5639 = vmatprep.mubr.msk.f32.mxu1 %vm269_vm1, %v7518_v8  ;;  %v6655_v12 = vpop.f32.mrf.mxu0 }
  0xd7   : > { %v6657_v45 = vpop.f32.mrf.mxu1 }
  0xd8   : > { %v6659_v14 = vpop.f32.mrf.mxu0  ;;  %5690 = vmatmul.mubr.msk.f32.gmra.mxu0 %vm269_vm1, %v6001_v20  ;;  %v7525_v20 = vld [vmem:[#allocation27_spill] sm:$0xff] }
  0xd9   : > { %v6661_v44 = vpop.f32.mrf.mxu1  ;;  %5640 = vmatmul.mubr.msk.f32.gmra.mxu1 %vm269_vm1, %v7520_v11  ;;  %5692 = vmatprep.mubr.msk.f32.mxu0 %vm269_vm1, %v6007_v22 }
  0xda   : > { %7519 = vst [vmem:[#allocation4_spill] sm:$0xff] %v6661_v44  ;;  %5642 = vmatprep.mubr.msk.f32.mxu1 %vm269_vm1, %v7521_v16  ;;  %v6671_v18 = vpop.f32.mrf.mxu0  ;;  %v7532_v44 = vld [vmem:[#allocation33_spill] sm:$0xff] }
  0xdb   : > { %v6673_v50 = vpop.f32.mrf.mxu1 }
  0xdc   : > { %7522 = vst [vmem:[#allocation5_spill] sm:$0xff] %v6673_v50  ;;  %v6675_v48 = vpop.f32.mrf.mxu0  ;;  %5693 = vmatmul.mubr.msk.f32.gmra.mxu0 %vm269_vm1, %v6021_v24  ;;  %v7529_v24 = vld [vmem:[#allocation31_spill] sm:$0xff] }
  0xdd   : > { %v6677_v54 = vpop.f32.mrf.mxu1  ;;  %5643 = vmatmul.mubr.msk.f32.gmra.mxu1 %vm269_vm1, %v7524_v52  ;;  %5695 = vmatprep.mubr.msk.f32.mxu0 %vm269_vm1, %v6027_v26 }
  0xde   : > { %7523 = vst [vmem:[#allocation6_spill] sm:$0xff] %v6677_v54  ;;  %5645 = vmatprep.mubr.msk.f32.mxu1 %vm269_vm1, %v7525_v20  ;;  %v6687_v22 = vpop.f32.mrf.mxu0  ;;  %v7528_v54 = vld [vmem:[#allocation29_spill] sm:$0xff] }
  0xdf   : > { %v6689_v58 = vpop.f32.mrf.mxu1 }
  0xe0   : > { %7526 = vst [vmem:[#allocation7_spill] sm:$0xff] %v6689_v58  ;;  %v6691_v50 = vpop.f32.mrf.mxu0  ;;  %5696 = vmatmul.mubr.msk.f32.gmra.mxu0 %vm269_vm1, %v6041_v28  ;;  %v7533_v28 = vld [vmem:[#allocation35_spill] sm:$0xff] }
  0xe1   : > { %v6693_v56 = vpop.f32.mrf.mxu1  ;;  %5646 = vmatmul.mubr.msk.f32.gmra.mxu1 %vm269_vm1, %v7528_v54  ;;  %5698 = vmatprep.mubr.msk.f32.mxu0 %vm269_vm1, %v6047_v30 }
  0xe2   : > { %7527 = vst [vmem:[#allocation8_spill] sm:$0xff] %v6693_v56  ;;  %5648 = vmatprep.mubr.msk.f32.mxu1 %vm269_vm1, %v7529_v24  ;;  %v6703_v26 = vpop.f32.mrf.mxu0 }
  0xe3   : > { %v6705_v20 = vpop.f32.mrf.mxu1 }
  0xe4   : > { %7530 = vst [vmem:[#allocation9_spill] sm:$0xff] %v6705_v20  ;;  %v6707_v58 = vpop.f32.mrf.mxu0  ;;  %5699 = vmatmul.mubr.msk.f32.gmra.mxu0 %vm269_vm1, %v6061_v32  ;;  %v7536_v32 = vld [vmem:[#allocation38_spill] sm:$0xff] }
  0xe5   : > { %v6709_v56 = vpop.f32.mrf.mxu1  ;;  %5649 = vmatmul.mubr.msk.f32.gmra.mxu1 %vm269_vm1, %v7532_v44  ;;  %5701 = vmatprep.mubr.msk.f32.mxu0 %vm269_vm1, %v6067_v34 }
  0xe6   : > { %7531 = vst [vmem:[#allocation10_spill] sm:$0xff] %v6709_v56  ;;  %5651 = vmatprep.mubr.msk.f32.mxu1 %vm269_vm1, %v7533_v28  ;;  %v6719_v30 = vpop.f32.mrf.mxu0  ;;  %v6740_v28 = vld [vmem:[%s5915_s22 + $0x182] sm:$0xff] }
  0xe7   : > { %v6721_v20 = vpop.f32.mrf.mxu1  ;;  %7538 = vst [vmem:[#allocation14_spill] sm:$0xff] %v6740_v28 }
  0xe8   : > { %7534 = vst [vmem:[#allocation11_spill] sm:$0xff] %v6721_v20  ;;  %v6723_v24 = vpop.f32.mrf.mxu0  ;;  %5702 = vmatmul.mubr.msk.f32.gmra.mxu0 %vm269_vm1, %v7498_v41  ;;  %v4893_v41 = vld [vmem:[%s5915_s22 + $0x1a0] sm:$0xff] }
  0xe9   : > { %v6725_v56 = vpop.f32.mrf.mxu1  ;;  %5652 = vmatmul.mubr.msk.f32.gmra.mxu1 %vm269_vm1, %v6387_v40  ;;  %5704 = vmatprep.mubr.msk.f32.mxu0 %vm269_vm1, %v6548_v7  ;;  %v7540_v40 = vld [vmem:[#allocation39_spill] sm:$0xff]  ;;  %v6755_v7 = vld [vmem:[%s5915_s22 + $0x18a] sm:$0xff] }
  0xea   : > { %7535 = vst [vmem:[#allocation12_spill] sm:$0xff] %v6725_v56  ;;  %5654 = vmatprep.mubr.msk.f32.mxu1 %vm269_vm1, %v7536_v32  ;;  %v6735_v34 = vpop.f32.mrf.mxu0  ;;  %v4892_v56 = vld [vmem:[%s5915_s22 + $0x198] sm:$0xff]  ;;  %7541 = vst [vmem:[#allocation16_spill] sm:$0xff] %v6755_v7 }
  0xeb   : > { %v6737_v20 = vpop.f32.mrf.mxu1 }
  0xec   : > { %7537 = vst [vmem:[#allocation13_spill] sm:$0xff] %v6737_v20  ;;  %v6743_v44 = vpop.f32.mrf.mxu0  ;;  %5705 = vmatmul.mubr.msk.f32.gmra.mxu0 %vm269_vm1, %v6562_v43 }
  0xed   : > { %v6745_v54 = vpop.f32.mrf.mxu1  ;;  %5655 = vmatmul.mubr.msk.f32.gmra.mxu1 %vm269_vm1, %v7540_v40  ;;  %5707 = vmatprep.mubr.msk.f32.mxu0 %vm269_vm1, %v4892_v56 }
  0xee   : > { %7539 = vst [vmem:[#allocation15_spill] sm:$0xff] %v6745_v54  ;;  %5657 = vmatprep.mubr.msk.f32.mxu1 %vm269_vm1, %v6740_v28  ;;  %v6758_v32 = vpop.f32.mrf.mxu0 }
  0xef   : > { %v6760_v20 = vpop.f32.mrf.mxu1 }
  0xf0   : > { %7542 = vst [vmem:[#allocation17_spill] sm:$0xff] %v6760_v20  ;;  %v6762_v52 = vpop.f32.mrf.mxu0  ;;  %5708 = vmatmul.mubr.msk.f32.gmra.mxu0 %vm269_vm1, %v4893_v41 }
  0xf1   : > { %v6764_v54 = vpop.f32.mrf.mxu1  ;;  %5658 = vmatmul.mubr.msk.f32.gmra.mxu1 %vm269_vm1, %v6755_v7  ;;  %5762 = vmatprep.mubr.msk.f32.mxu0 %vm269_vm1, %v7502_v46 }
  0xf2   : > { %7543 = vst [vmem:[#allocation18_spill] sm:$0xff] %v6764_v54  ;;  %5712 = vmatprep.mubr.msk.f32.mxu1 %vm269_vm1, %v6126_v47  ;;  %v6773_v56 = vpop.f32.mrf.mxu0 }
  0xf3   : > { %v6775_v40 = vpop.f32.mrf.mxu1 }
  0xf4   : > { %7544 = vst [vmem:[#allocation19_spill] sm:$0xff] %v6775_v40  ;;  %v5464_v20 = vpop.f32.mrf.mxu0  ;;  %5763 = vmatmul.mubr.msk.f32.vlgmr.msra.gmra.mxu0 %vm269_vm1, %v7503_v42 }
  0xf5   : > { %v5414_v43 = vpop.f32.mrf.mxu1  ;;  %5713 = vmatmul.mubr.msk.f32.vlgmr.msra.gmra.mxu1 %vm269_vm1, %v6144_v49  ;;  %5765 = vmatprep.mubr.msk.f32.mxu0 %vm269_vm1, %v7504_v13 }
  0xf6   : > { %v1050_v41 = vadd.f32 %v5414_v43, %v6643_v4  ;;  %5715 = vmatprep.mubr.msk.f32.mxu1 %vm269_vm1, %v6150_v51  ;;  %v1344_v46 = vpop.f32.mrf.mxu0 }
  0xf7   : > { %v890_v47 = vpop.f32.mrf.mxu1 }
  0xf8   : > { %v6786_v54 = vadd.f32 %v5464_v20, %v1050_v41  ;;  %v1049_v40 = vadd.f32 %v890_v47, %v6655_v12  ;;  %v5467_v28 = vpop.f32.mrf.mxu0  ;;  %5766 = vmatmul.mubr.msk.f32.gmra.mxu0 %vm269_vm1, %v7505_v15 }
  0xf9   : > { %v5417_v7 = vpop.f32.mrf.mxu1  ;;  %5716 = vmatmul.mubr.msk.f32.gmra.mxu1 %vm269_vm1, %v6164_v53  ;;  %5768 = vmatprep.mubr.msk.f32.mxu0 %vm269_vm1, %v7506_v36 }
  0xfa   : > { %v6793_v49 = vadd.f32 %v1344_v46, %v1049_v40  ;;  %v1052_v51 = vadd.f32 %v5417_v7, %v6659_v14  ;;  %5718 = vmatprep.mubr.msk.f32.mxu1 %vm269_vm1, %v6170_v55  ;;  %v1354_v13 = vpop.f32.mrf.mxu0 }
  0xfb   : > { %v900_v42 = vpop.f32.mrf.mxu1 }
  0xfc   : > { %v6800_v4 = vadd.f32 %v5467_v28, %v1052_v51  ;;  %v1051_v12 = vadd.f32 %v900_v42, %v6671_v18  ;;  %v5470_v20 = vpop.f32.mrf.mxu0  ;;  %5769 = vmatmul.mubr.msk.f32.gmra.mxu0 %vm269_vm1, %v7507_v17 }
  0xfd   : > { %v5420_v53 = vpop.f32.mrf.mxu1  ;;  %5719 = vmatmul.mubr.msk.f32.gmra.mxu1 %vm269_vm1, %v6184_v57  ;;  %5771 = vmatprep.mubr.msk.f32.mxu0 %vm269_vm1, %v7508_v19 }
  0xfe   : > { %v6807_v15 = vadd.f32 %v1354_v13, %v1051_v12  ;;  %v1054_v55 = vadd.f32 %v5420_v53, %v6675_v48  ;;  %5721 = vmatprep.mubr.msk.f32.mxu1 %vm269_vm1, %v6190_v59  ;;  %v1364_v14 = vpop.f32.mrf.mxu0 }
  0xff   : > { %v910_v36 = vpop.f32.mrf.mxu1 }
 0x100   : > { %v6814_v18 = vadd.f32 %v5470_v20, %v1054_v55  ;;  %v1053_v28 = vadd.f32 %v910_v36, %v6687_v22  ;;  %v5473_v7 = vpop.f32.mrf.mxu0  ;;  %5772 = vmatmul.mubr.msk.f32.gmra.mxu0 %vm269_vm1, %v7509_v21 }
 0x101   : > { %v5423_v57 = vpop.f32.mrf.mxu1  ;;  %5722 = vmatmul.mubr.msk.f32.gmra.mxu1 %vm269_vm1, %v6204_v61  ;;  %5774 = vmatprep.mubr.msk.f32.mxu0 %vm269_vm1, %v7510_v23 }
 0x102   : > { %v6821_v48 = vadd.f32 %v1364_v14, %v1053_v28  ;;  %v1056_v59 = vadd.f32 %v5423_v57, %v6691_v50  ;;  %5724 = vmatprep.mubr.msk.f32.mxu1 %vm269_vm1, %v6210_v63  ;;  %v1374_v19 = vpop.f32.mrf.mxu0  ;;  %v7547_v14 = vld [vmem:[#allocation26_spill] sm:$0xff] }
 0x103   : > { %v920_v17 = vpop.f32.mrf.mxu1 }
 0x104   : > { %v6828_v22 = vadd.f32 %v5473_v7, %v1056_v59  ;;  %v1055_v40 = vadd.f32 %v920_v17, %v6703_v26  ;;  %v5476_v43 = vpop.f32.mrf.mxu0  ;;  %5775 = vmatmul.mubr.msk.f32.gmra.mxu0 %vm269_vm1, %v7511_v25  ;;  %v7549_v7 = vld [vmem:[#allocation5_spill] sm:$0xff] }
 0x105   : > { %v5426_v61 = vpop.f32.mrf.mxu1  ;;  %5725 = vmatmul.mubr.msk.f32.gmra.mxu1 %vm269_vm1, %v6224_v1  ;;  %5777 = vmatprep.mubr.msk.f32.mxu0 %vm269_vm1, %v7512_v27 }
 0x106   : > { %v6835_v50 = vadd.f32 %v1374_v19, %v1055_v40  ;;  %v1058_v63 = vadd.f32 %v5426_v61, %v6707_v58  ;;  %5727 = vmatprep.mubr.msk.f32.mxu1 %vm269_vm1, %v6230_v3  ;;  %v1384_v23 = vpop.f32.mrf.mxu0  ;;  %v7550_v19 = vld [vmem:[#allocation28_spill] sm:$0xff]  ;;  %v7551_v40 = vld [vmem:[#allocation29_spill] sm:$0xff] }
 0x107   : > { %v930_v21 = vpop.f32.mrf.mxu1 }
 0x108   : > { %v6842_v26 = vadd.f32 %v5476_v43, %v1058_v63  ;;  %v1057_v41 = vadd.f32 %v930_v21, %v6719_v30  ;;  %v5479_v47 = vpop.f32.mrf.mxu0  ;;  %5778 = vmatmul.mubr.msk.f32.gmra.mxu0 %vm269_vm1, %v7513_v29  ;;  %v7552_v43 = vld [vmem:[#allocation6_spill] sm:$0xff] }
 0x109   : > { %v5429_v1 = vpop.f32.mrf.mxu1  ;;  %5728 = vmatmul.mubr.msk.f32.gmra.mxu1 %vm269_vm1, %v6244_v9  ;;  %5780 = vmatprep.mubr.msk.f32.mxu0 %vm269_vm1, %v7514_v31  ;;  %v7553_v21 = vld [vmem:[#allocation30_spill] sm:$0xff] }
 0x10a   : > { %v6849_v58 = vadd.f32 %v1384_v23, %v1057_v41  ;;  %v1060_v3 = vadd.f32 %v5429_v1, %v6723_v24  ;;  %5730 = vmatprep.mubr.msk.f32.mxu1 %vm269_vm1, %v6250_v37  ;;  %v1394_v27 = vpop.f32.mrf.mxu0  ;;  %v7554_v23 = vld [vmem:[#allocation31_spill] sm:$0xff] }
 0x10b   : > { %v940_v25 = vpop.f32.mrf.mxu1 }
 0x10c   : > { %v6856_v30 = vadd.f32 %v5479_v47, %v1060_v3  ;;  %v1059_v46 = vadd.f32 %v940_v25, %v6735_v34  ;;  %v5482_v51 = vpop.f32.mrf.mxu0  ;;  %5781 = vmatmul.mubr.msk.f32.gmra.mxu0 %vm269_vm1, %v7515_v33  ;;  %v7555_v3 = vld [vmem:[#allocation7_spill] sm:$0xff] }
 0x10d   : > { %v5432_v9 = vpop.f32.mrf.mxu1  ;;  %5731 = vmatmul.mubr.msk.f32.gmra.mxu1 %vm269_vm1, %v6264_v39  ;;  %5783 = vmatprep.mubr.msk.f32.mxu0 %vm269_vm1, %v7516_v35 }
 0x10e   : > { %v6863_v29 = vadd.f32 %v1394_v27, %v1059_v46  ;;  %v1062_v37 = vadd.f32 %v5432_v9, %v6743_v44  ;;  %5733 = vmatprep.mubr.msk.f32.mxu1 %vm269_vm1, %v6270_v5  ;;  %v1404_v24 = vpop.f32.mrf.mxu0  ;;  %v7556_v9 = vld [vmem:[#allocation32_spill] sm:$0xff] }
 0x10f   : > { %v950_v31 = vpop.f32.mrf.mxu1 }
 0x110   : > { %v6870_v34 = vadd.f32 %v5482_v51, %v1062_v37  ;;  %v1061_v42 = vadd.f32 %v950_v31, %v6758_v32  ;;  %v5485_v13 = vpop.f32.mrf.mxu0  ;;  %5784 = vmatmul.mubr.msk.f32.gmra.mxu0 %vm269_vm1, %v7517_v10  ;;  %v7557_v51 = vld [vmem:[#allocation33_spill] sm:$0xff]  ;;  %v7558_v31 = vld [vmem:[#allocation8_spill] sm:$0xff] }
 0x111   : > { %v5435_v39 = vpop.f32.mrf.mxu1  ;;  %5734 = vmatmul.mubr.msk.f32.gmra.mxu1 %vm269_vm1, %v6284_v38  ;;  %5786 = vmatprep.mubr.msk.f32.mxu0 %vm269_vm1, %v7518_v8 }
 0x112   : > { %v6877_v44 = vadd.f32 %v1404_v24, %v1061_v42  ;;  %v1064_v5 = vadd.f32 %v5435_v39, %v6762_v52  ;;  %5736 = vmatprep.mubr.msk.f32.mxu1 %vm269_vm1, %v6290_v0  ;;  %v1414_v35 = vpop.f32.mrf.mxu0  ;;  %v7559_v42 = vld [vmem:[#allocation34_spill] sm:$0xff]  ;;  %v7560_v39 = vld [vmem:[#allocation35_spill] sm:$0xff] }
 0x113   : > { %v960_v33 = vpop.f32.mrf.mxu1 }
 0x114   : > { %v6884_v32 = vadd.f32 %v5485_v13, %v1064_v5  ;;  %v1063_v12 = vadd.f32 %v960_v33, %v6773_v56  ;;  %v5488_v53 = vpop.f32.mrf.mxu0  ;;  %5787 = vmatmul.mubr.msk.f32.gmra.mxu0 %vm269_vm1, %v7520_v11  ;;  %v7545_v11 = vld [vmem:[#allocation25_spill] sm:$0xff] }
 0x115   : > { %v5438_v38 = vpop.f32.mrf.mxu1  ;;  %5737 = vmatmul.mubr.msk.f32.gmra.mxu1 %vm269_vm1, %v6304_v2  ;;  %5789 = vmatprep.mubr.msk.f32.mxu0 %vm269_vm1, %v7521_v16  ;;  %v7548_v16 = vld [vmem:[#allocation27_spill] sm:$0xff]  ;;  %v4954_v33 = vld [vmem:[%s5915_s22 + $0x169] sm:$0xff] }
 0x116   : > { %v6891_v52 = vadd.f32 %v1414_v35, %v1063_v12  ;;  %v1066_v0 = vadd.f32 %v5438_v38, %v6645_v6  ;;  %5739 = vmatprep.mubr.msk.f32.mxu1 %vm269_vm1, %v6310_v60  ;;  %v1424_v8 = vpop.f32.mrf.mxu0  ;;  %v7546_v60 = vld [vmem:[#allocation4_spill] sm:$0xff]  ;;  %v7561_v38 = vld [vmem:[#allocation9_spill] sm:$0xff] }
 0x117   : > { %v970_v10 = vpop.f32.mrf.mxu1  ;;  %v5020_v35 = vld [vmem:[%s5915_s22 + $0x16a] sm:$0xff] }
 0x118   : > { %v6898_v56 = vadd.f32 %v5488_v53, %v1066_v0  ;;  %v1065_v20 = vadd.f32 %v970_v10, %v6657_v45  ;;  %v5491_v55 = vpop.f32.mrf.mxu0  ;;  %5790 = vmatmul.mubr.msk.f32.gmra.mxu0 %vm269_vm1, %v7545_v11 }
 0x119   : > { %v5441_v2 = vpop.f32.mrf.mxu1  ;;  %5740 = vmatmul.mubr.msk.f32.gmra.mxu1 %vm269_vm1, %v6324_v62  ;;  %5792 = vmatprep.mubr.msk.f32.mxu0 %vm269_vm1, %v7548_v16 }
 0x11a   : > { %v6905_v6 = vadd.f32 %v1424_v8, %v1065_v20  ;;  %v1068_v36 = vadd.f32 %v5441_v2, %v7546_v60  ;;  %5742 = vmatprep.mubr.msk.f32.mxu1 %vm269_vm1, %v7547_v14  ;;  %v1434_v45 = vpop.f32.mrf.mxu0  ;;  %v7562_v8 = vld [vmem:[#allocation36_spill] sm:$0xff]  ;;  %v7563_v20 = vld [vmem:[#allocation37_spill] sm:$0xff] }
 0x11b   : > { %v980_v28 = vpop.f32.mrf.mxu1  ;;  %v4955_v60 = vld [vmem:[%s5915_s22 + $0x171] sm:$0xff] }
 0x11c   : > { %v6912_v57 = vadd.f32 %v5491_v55, %v1068_v36  ;;  %v1067_v59 = vadd.f32 %v980_v28, %v7549_v7  ;;  %v5494_v17 = vpop.f32.mrf.mxu0  ;;  %5793 = vmatmul.mubr.msk.f32.gmra.mxu0 %vm269_vm1, %v7551_v40  ;;  %v7564_v55 = vld [vmem:[#allocation10_spill] sm:$0xff] }
 0x11d   : > { %v5444_v62 = vpop.f32.mrf.mxu1  ;;  %5743 = vmatmul.mubr.msk.f32.gmra.mxu1 %vm269_vm1, %v7550_v19  ;;  %5795 = vmatprep.mubr.msk.f32.mxu0 %vm269_vm1, %v7554_v23  ;;  %v5021_v36 = vld [vmem:[%s5915_s22 + $0x172] sm:$0xff]  ;;  %v7566_v19 = vld [vmem:[#allocation12_spill] sm:$0xff] }
 0x11e   : > { %v6919_v61 = vadd.f32 %v1434_v45, %v1067_v59  ;;  %v1070_v63 = vadd.f32 %v5444_v62, %v7552_v43  ;;  %5745 = vmatprep.mubr.msk.f32.mxu1 %vm269_vm1, %v7553_v21  ;;  %v1444_v1 = vpop.f32.mrf.mxu0  ;;  %v7565_v45 = vld [vmem:[#allocation11_spill] sm:$0xff]  ;;  %v7567_v43 = vld [vmem:[#allocation40_spill] sm:$0xff] }
 0x11f   : > { %v990_v41 = vpop.f32.mrf.mxu1 }
 0x120   : > { %v6926_v47 = vadd.f32 %v5494_v17, %v1070_v63  ;;  %v1069_v25 = vadd.f32 %v990_v41, %v7555_v3  ;;  %v5497_v46 = vpop.f32.mrf.mxu0  ;;  %5796 = vmatmul.mubr.msk.f32.gmra.mxu0 %vm269_vm1, %v7557_v51  ;;  %v7568_v63 = vld [vmem:[#allocation14_spill] sm:$0xff]  ;;  %v7570_v51 = vld [vmem:[#allocation3_spill] sm:$0xff] }
 0x121   : > { %v5447_v27 = vpop.f32.mrf.mxu1  ;;  %5746 = vmatmul.mubr.msk.f32.gmra.mxu1 %vm269_vm1, %v7556_v9  ;;  %5798 = vmatprep.mubr.msk.f32.mxu0 %vm269_vm1, %v7560_v39  ;;  %v4958_v41 = vld [vmem:[%s5915_s22 + $0x199] sm:$0xff] }
 0x122   : > { %v6933_v37 = vadd.f32 %v1444_v1, %v1069_v25  ;;  %v1072_v24 = vadd.f32 %v5447_v27, %v7558_v31  ;;  %5748 = vmatprep.mubr.msk.f32.mxu1 %vm269_vm1, %v7559_v42  ;;  %v1454_v5 = vpop.f32.mrf.mxu0  ;;  %v5024_v1 = vld [vmem:[%s5915_s22 + $0x19a] sm:$0xff]  ;;  %v7569_v25 = vld [vmem:[#allocation13_spill] sm:$0xff]  ;;  %v7571_v31 = vld [vmem:[#allocation16_spill] sm:$0xff] }
 0x123   : > { %v1000_v13 = vpop.f32.mrf.mxu1  ;;  %v7572_v42 = vld [vmem:[#allocation15_spill] sm:$0xff] }
 0x124   : > { %v6942_v12 = vadd.f32 %v5497_v46, %v1072_v24  ;;  %v1071_v53 = vadd.f32 %v1000_v13, %v7561_v38  ;;  %v5500_v10 = vpop.f32.mrf.mxu0  ;;  %5799 = vmatmul.mubr.msk.f32.gmra.mxu0 %vm269_vm1, %v7563_v20  ;;  %v4959_v13 = vld [vmem:[%s5915_s22 + $0x1a1] sm:$0xff] }
 0x125   : > { %v5450_v0 = vpop.f32.mrf.mxu1  ;;  %5749 = vmatmul.mubr.msk.f32.gmra.mxu1 %vm269_vm1, %v7562_v8  ;;  %5801 = vmatprep.mubr.msk.f32.mxu0 %vm269_vm1, %v5020_v35 }
 0x126   : > { %v6949_v2 = vadd.f32 %v1454_v5, %v1071_v53  ;;  %v1074_v11 = vadd.f32 %v5450_v0, %v7564_v55  ;;  %5751 = vmatprep.mubr.msk.f32.mxu1 %vm269_vm1, %v4954_v33  ;;  %v1464_v16 = vpop.f32.mrf.mxu0  ;;  %v5025_v5 = vld [vmem:[%s5915_s22 + $0x1a2] sm:$0xff]  ;;  %v7573_v53 = vld [vmem:[#allocation17_spill] sm:$0xff]  ;;  %v7574_v55 = vld [vmem:[#allocation18_spill] sm:$0xff] }
 0x127   : > { %v1010_v14 = vpop.f32.mrf.mxu1 }
 0x128   : > { %v6956_v28 = vadd.f32 %v5500_v10, %v1074_v11  ;;  %v1073_v7 = vadd.f32 %v1010_v14, %v7565_v45  ;;  %v5503_v62 = vpop.f32.mrf.mxu0  ;;  %5802 = vmatmul.mubr.msk.f32.gmra.mxu0 %vm269_vm1, %v5021_v36 }
 0x129   : > { %v5453_v59 = vpop.f32.mrf.mxu1  ;;  %5752 = vmatmul.mubr.msk.f32.gmra.mxu1 %vm269_vm1, %v4955_v60  ;;  %5804 = vmatprep.mubr.msk.f32.mxu0 %vm269_vm1, %v7568_v63 }
 0x12a   : > { %v6961_v17 = vadd.f32 %v1464_v16, %v1073_v7  ;;  %v1076_v40 = vadd.f32 %v5453_v59, %v7566_v19  ;;  %5754 = vmatprep.mubr.msk.f32.mxu1 %vm269_vm1, %v7567_v43  ;;  %v1474_v23 = vpop.f32.mrf.mxu0  ;;  %v7575_v16 = vld [vmem:[#allocation19_spill] sm:$0xff] }
 0x12b   : > { %v1020_v21 = vpop.f32.mrf.mxu1 }
 0x12c   : > { %v6970_v3 = vadd.f32 %v5503_v62, %v1076_v40  ;;  %v1075_v27 = vadd.f32 %v1020_v21, %v7569_v25  ;;  %v5506_v9 = vpop.f32.mrf.mxu0  ;;  %5805 = vmatmul.mubr.msk.f32.gmra.mxu0 %vm269_vm1, %v7571_v31 }
 0x12d   : > { %v5456_v46 = vpop.f32.mrf.mxu1  ;;  %5755 = vmatmul.mubr.msk.f32.gmra.mxu1 %vm269_vm1, %v7570_v51  ;;  %5807 = vmatprep.mubr.msk.f32.mxu0 %vm269_vm1, %v5024_v1 }
 0x12e   : > { %v6977_v24 = vadd.f32 %v1474_v23, %v1075_v27  ;;  %v1078_v39 = vadd.f32 %v5456_v46, %v7572_v42  ;;  %5757 = vmatprep.mubr.msk.f32.mxu1 %vm269_vm1, %v4958_v41  ;;  %v1484_v35 = vpop.f32.mrf.mxu0 }
 0x12f   : > { %v1030_v33 = vpop.f32.mrf.mxu1 }
 0x130   : > { %v6984_v38 = vadd.f32 %v5506_v9, %v1078_v39  ;;  %v1077_v0 = vadd.f32 %v1030_v33, %v7573_v53  ;;  %v5509_v8 = vpop.f32.mrf.mxu0  ;;  %5808 = vmatmul.mubr.msk.f32.gmra.mxu0 %vm269_vm1, %v5025_v5 }
 0x131   : > { %v5459_v10 = vpop.f32.mrf.mxu1  ;;  %5758 = vmatmul.mubr.msk.f32.gmra.mxu1 %vm269_vm1, %v4959_v13 }
 0x132   : > { %v6989_v20 = vadd.f32 %v1484_v35, %v1077_v0  ;;  %v1080_v11 = vadd.f32 %v5459_v10, %v7574_v55  ;;  %v1494_v36 = vpop.f32.mrf.mxu0 }
 0x133   : > { %v1040_v60 = vpop.f32.mrf.mxu1 }
 0x134   : > { %v6992_v14 = vadd.f32 %v5509_v8, %v1080_v11  ;;  %v1079_v45 = vadd.f32 %v1040_v60, %v7575_v16  ;;  %v5564_v59 = vpop.f32.mrf.mxu0 }
 0x135   : > { %v5514_v7 = vpop.f32.mrf.mxu1 }
 0x136   : > { %v6995_v62 = vadd.f32 %v1494_v36, %v1079_v45  ;;  %v1961_v19 = vadd.f32 %v5514_v7, %v6786_v54  ;;  %v2255_v43 = vpop.f32.mrf.mxu0 }
 0x137   : > { %v1801_v40 = vpop.f32.mrf.mxu1 }
 0x138   : > { %v6998_v63 = vadd.f32 %v5564_v59, %v1961_v19  ;;  %v1960_v21 = vadd.f32 %v1801_v40, %v6793_v49  ;;  %v5567_v41 = vpop.f32.mrf.mxu0 }
 0x139   : > { %v5517_v23 = vpop.f32.mrf.mxu1 }
 0x13a   : > { %v7001_v1 = vadd.f32 %v2255_v43, %v1960_v21  ;;  %v1963_v25 = vadd.f32 %v5517_v23, %v6800_v4  ;;  %v2265_v46 = vpop.f32.mrf.mxu0 }
 0x13b   : > { %v1811_v27 = vpop.f32.mrf.mxu1 }
 0x13c   : > { %v7004_v9 = vadd.f32 %v5567_v41, %v1963_v25  ;;  %v1962_v51 = vadd.f32 %v1811_v27, %v6807_v15  ;;  %v5570_v54 = vpop.f32.mrf.mxu0 }
 0x13d   : > { %v5520_v31 = vpop.f32.mrf.mxu1 }
 0x13e   : > { %v7007_v42 = vadd.f32 %v2265_v46, %v1962_v51  ;;  %v1965_v39 = vadd.f32 %v5520_v31, %v6814_v18  ;;  %v2275_v49 = vpop.f32.mrf.mxu0 }
 0x13f   : > { %v1821_v13 = vpop.f32.mrf.mxu1 }
 0x140   : > { %v7010_v5 = vadd.f32 %v5570_v54, %v1965_v39  ;;  %v1964_v33 = vadd.f32 %v1821_v13, %v6821_v48  ;;  %v5573_v4 = vpop.f32.mrf.mxu0 }
 0x141   : > { %v5523_v35 = vpop.f32.mrf.mxu1 }
 0x142   : > { %v7013_v53 = vadd.f32 %v2275_v49, %v1964_v33  ;;  %v1967_v0 = vadd.f32 %v5523_v35, %v6828_v22  ;;  %v2285_v15 = vpop.f32.mrf.mxu0 }
 0x143   : > { %v1831_v10 = vpop.f32.mrf.mxu1 }
 0x144   : > { %v7016_v8 = vadd.f32 %v5573_v4, %v1967_v0  ;;  %v1966_v55 = vadd.f32 %v1831_v10, %v6835_v50  ;;  %v5576_v18 = vpop.f32.mrf.mxu0 }
 0x145   : > { %v5526_v11 = vpop.f32.mrf.mxu1 }
 0x146   : > { %v7019_v60 = vadd.f32 %v2285_v15, %v1966_v55  ;;  %v1969_v36 = vadd.f32 %v5526_v11, %v6842_v26  ;;  %v2295_v48 = vpop.f32.mrf.mxu0 }
 0x147   : > { %v1841_v16 = vpop.f32.mrf.mxu1 }
 0x148   : > { %v7022_v45 = vadd.f32 %v5576_v18, %v1969_v36  ;;  %v1968_v7 = vadd.f32 %v1841_v16, %v6849_v58  ;;  %v5579_v22 = vpop.f32.mrf.mxu0 }
 0x149   : > { %v5529_v59 = vpop.f32.mrf.mxu1 }
 0x14a   : > { %v7025_v19 = vadd.f32 %v2295_v48, %v1968_v7  ;;  %v1971_v40 = vadd.f32 %v5529_v59, %v6856_v30  ;;  %v2305_v50 = vpop.f32.mrf.mxu0 }
 0x14b   : > { %v1851_v43 = vpop.f32.mrf.mxu1 }
 0x14c   : > { %v7028_v21 = vadd.f32 %v5579_v22, %v1971_v40  ;;  %v1970_v23 = vadd.f32 %v1851_v43, %v6863_v29  ;;  %v5582_v26 = vpop.f32.mrf.mxu0 }
 0x14d   : > { %v5532_v41 = vpop.f32.mrf.mxu1 }
 0x14e   : > { %v7031_v25 = vadd.f32 %v2305_v50, %v1970_v23  ;;  %v1973_v27 = vadd.f32 %v5532_v41, %v6870_v34  ;;  %v2315_v58 = vpop.f32.mrf.mxu0 }
 0x14f   : > { %v1861_v46 = vpop.f32.mrf.mxu1 }
 0x150   : > { %v7034_v51 = vadd.f32 %v5582_v26, %v1973_v27  ;;  %v1972_v31 = vadd.f32 %v1861_v46, %v6877_v44  ;;  %v5585_v30 = vpop.f32.mrf.mxu0 }
 0x151   : > { %v5535_v54 = vpop.f32.mrf.mxu1 }
 0x152   : > { %v7037_v39 = vadd.f32 %v2315_v58, %v1972_v31  ;;  %v1975_v13 = vadd.f32 %v5535_v54, %v6884_v32  ;;  %v2325_v29 = vpop.f32.mrf.mxu0 }
 0x153   : > { %v1871_v49 = vpop.f32.mrf.mxu1 }
 0x154   : > { %v7040_v33 = vadd.f32 %v5585_v30, %v1975_v13  ;;  %v1974_v35 = vadd.f32 %v1871_v49, %v6891_v52  ;;  %v5588_v34 = vpop.f32.mrf.mxu0 }
 0x155   : > { %v5538_v4 = vpop.f32.mrf.mxu1 }
 0x156   : > { %v7043_v0 = vadd.f32 %v2325_v29, %v1974_v35  ;;  %v1977_v10 = vadd.f32 %v5538_v4, %v6898_v56  ;;  %v2335_v44 = vpop.f32.mrf.mxu0 }
 0x157   : > { %v1881_v15 = vpop.f32.mrf.mxu1 }
 0x158   : > { %v7046_v55 = vadd.f32 %v5588_v34, %v1977_v10  ;;  %v1976_v11 = vadd.f32 %v1881_v15, %v6905_v6  ;;  %v5591_v32 = vpop.f32.mrf.mxu0 }
 0x159   : > { %v5541_v18 = vpop.f32.mrf.mxu1 }
 0x15a   : > { %v7049_v36 = vadd.f32 %v2335_v44, %v1976_v11  ;;  %v1979_v16 = vadd.f32 %v5541_v18, %v6912_v57  ;;  %v2345_v52 = vpop.f32.mrf.mxu0 }
 0x15b   : > { %v1891_v48 = vpop.f32.mrf.mxu1 }
 0x15c   : > { %v7052_v7 = vadd.f32 %v5591_v32, %v1979_v16  ;;  %v1978_v59 = vadd.f32 %v1891_v48, %v6919_v61  ;;  %v5594_v56 = vpop.f32.mrf.mxu0 }
 0x15d   : > { %v5544_v22 = vpop.f32.mrf.mxu1 }
 0x15e   : > { %7576 = vst [vmem:[#allocation20_spill] sm:$0xff] %v7052_v7  ;;  %v7055_v40 = vadd.f32 %v2345_v52, %v1978_v59  ;;  %v1981_v43 = vadd.f32 %v5544_v22, %v6926_v47  ;;  %v2355_v6 = vpop.f32.mrf.mxu0 }
 0x15f   : > { %v1901_v50 = vpop.f32.mrf.mxu1 }
 0x160   : > { %7577 = vst [vmem:[#allocation21_spill] sm:$0xff] %v7055_v40  ;;  %v7058_v23 = vadd.f32 %v5594_v56, %v1981_v43  ;;  %v1980_v41 = vadd.f32 %v1901_v50, %v6933_v37  ;;  %v5597_v57 = vpop.f32.mrf.mxu0 }
 0x161   : > { %v5547_v26 = vpop.f32.mrf.mxu1 }
 0x162   : > { %7578 = vst [vmem:[#allocation22_spill] sm:$0xff] %v7058_v23  ;;  %v7061_v27 = vadd.f32 %v2355_v6, %v1980_v41  ;;  %v1983_v46 = vadd.f32 %v5547_v26, %v6942_v12  ;;  %v2365_v61 = vpop.f32.mrf.mxu0 }
 0x163   : > { %v1911_v58 = vpop.f32.mrf.mxu1 }
 0x164   : > { %7579 = vst [vmem:[#allocation23_spill] sm:$0xff] %v7061_v27  ;;  %v7064_v31 = vadd.f32 %v5597_v57, %v1983_v46  ;;  %v1982_v54 = vadd.f32 %v1911_v58, %v6949_v2  ;;  %v5600_v47 = vpop.f32.mrf.mxu0 }
 0x165   : > { %v5550_v30 = vpop.f32.mrf.mxu1 }
 0x166   : > { %7580 = vst [vmem:[#allocation24_spill] sm:$0xff] %v7064_v31  ;;  %v7067_v13 = vadd.f32 %v2365_v61, %v1982_v54  ;;  %v1985_v49 = vadd.f32 %v5550_v30, %v6956_v28  ;;  %v2375_v37 = vpop.f32.mrf.mxu0 }
 0x167   : > { %v1921_v29 = vpop.f32.mrf.mxu1 }
 0x168   : > { %7581 = vst [vmem:[#allocation38_spill] sm:$0xff] %v7067_v13  ;;  %v7070_v35 = vadd.f32 %v5600_v47, %v1985_v49  ;;  %v1984_v4 = vadd.f32 %v1921_v29, %v6961_v17  ;;  %v5603_v12 = vpop.f32.mrf.mxu0 }
 0x169   : > { %v5553_v34 = vpop.f32.mrf.mxu1 }
 0x16a   : > { %7582 = vst [vmem:[#allocation39_spill] sm:$0xff] %v7070_v35  ;;  %v7073_v10 = vadd.f32 %v2375_v37, %v1984_v4  ;;  %v1987_v15 = vadd.f32 %v5553_v34, %v6970_v3  ;;  %v2385_v2 = vpop.f32.mrf.mxu0 }
 0x16b   : > { %v1931_v44 = vpop.f32.mrf.mxu1 }
 0x16c   : > { %7583 = vst [vmem:[#allocation25_spill] sm:$0xff] %v7073_v10  ;;  %v7076_v11 = vadd.f32 %v5603_v12, %v1987_v15  ;;  %v1986_v18 = vadd.f32 %v1931_v44, %v6977_v24  ;;  %v5606_v28 = vpop.f32.mrf.mxu0 }
 0x16d   : > { %v5556_v32 = vpop.f32.mrf.mxu1 }
 0x16e   : > { %7584 = vst [vmem:[#allocation4_spill] sm:$0xff] %v7076_v11  ;;  %v7079_v16 = vadd.f32 %v2385_v2, %v1986_v18  ;;  %v1989_v48 = vadd.f32 %v5556_v32, %v6984_v38  ;;  %v2395_v17 = vpop.f32.mrf.mxu0 }
 0x16f   : > { %v1941_v52 = vpop.f32.mrf.mxu1 }
 0x170   : > { %7585 = vst [vmem:[#allocation26_spill] sm:$0xff] %v7079_v16  ;;  %v7082_v59 = vadd.f32 %v5606_v28, %v1989_v48  ;;  %v1988_v22 = vadd.f32 %v1941_v52, %v6989_v20  ;;  %v5609_v3 = vpop.f32.mrf.mxu0 }
 0x171   : > { %v5559_v56 = vpop.f32.mrf.mxu1 }
 0x172   : > { %7586 = vst [vmem:[#allocation27_spill] sm:$0xff] %v7082_v59  ;;  %v7085_v43 = vadd.f32 %v2395_v17, %v1988_v22  ;;  %v1991_v50 = vadd.f32 %v5559_v56, %v6992_v14  ;;  %v2405_v24 = vpop.f32.mrf.mxu0 }
 0x173   : > { %v1951_v6 = vpop.f32.mrf.mxu1 }
 0x174   : > { %7587 = vst [vmem:[#allocation5_spill] sm:$0xff] %v7085_v43  ;;  %v7088_v41 = vadd.f32 %v5609_v3, %v1991_v50  ;;  %v1990_v26 = vadd.f32 %v1951_v6, %v6995_v62  ;;  %v7091_v38 = vpop.f32.mrf.mxu0 }
 0x175   : > { %v5614_v57 = vpop.f32.mrf.mxu1 }
 0x176   : > { %7588 = vst [vmem:[#allocation28_spill] sm:$0xff] %v7088_v41  ;;  %v7093_v46 = vadd.f32 %v2405_v24, %v1990_v26  ;;  %v7095_v61 = vpop.f32.mrf.mxu0 }
 0x177   : > { %v2709_v58 = vpop.f32.mrf.mxu1 }
 0x178   : > { %7589 = vst [vmem:[#allocation29_spill] sm:$0xff] %v7093_v46  ;;  %v7099_v54 = vpop.f32.mrf.mxu0 }
 0x179   : > { %v7097_v20 = vpop.f32.mrf.mxu1 }
 0x17a   : > { %v7103_v14 = vpop.f32.mrf.mxu0 }
 0x17b   : > { %v7101_v30 = vpop.f32.mrf.mxu1 }
 0x17c   : > { %v7107_v49 = vpop.f32.mrf.mxu0 }
 0x17d   : > { %v7105_v47 = vpop.f32.mrf.mxu1 }
 0x17e   : > { %v7111_v29 = vpop.f32.mrf.mxu0 }
 0x17f   : > { %v7109_v62 = vpop.f32.mrf.mxu1 }
 0x180   : > { %v7115_v4 = vpop.f32.mrf.mxu0 }
 0x181   : > { %v7113_v37 = vpop.f32.mrf.mxu1 }
 0x182   : > { %v7119_v12 = vpop.f32.mrf.mxu0 }
 0x183   : > { %v7117_v34 = vpop.f32.mrf.mxu1 }
 0x184   : > { %v7123_v44 = vpop.f32.mrf.mxu0 }
 0x185   : > { %v7121_v15 = vpop.f32.mrf.mxu1 }
 0x186   : > { %v7127_v18 = vpop.f32.mrf.mxu0 }
 0x187   : > { %v7125_v2 = vpop.f32.mrf.mxu1 }
 0x188   : > { %v7131_v28 = vpop.f32.mrf.mxu0 }
 0x189   : > { %v7129_v32 = vpop.f32.mrf.mxu1 }
 0x18a   : > { %v7135_v52 = vpop.f32.mrf.mxu0 }
 0x18b   : > { %v7133_v48 = vpop.f32.mrf.mxu1 }
 0x18c   : > { %v7139_v22 = vpop.f32.mrf.mxu0 }
 0x18d   : > { %v7137_v17 = vpop.f32.mrf.mxu1 }
 0x18e   : > { %v7143_v3 = vpop.f32.mrf.mxu0 }
 0x18f   : > { %v7141_v56 = vpop.f32.mrf.mxu1 }
 0x190   : > { %v7147_v6 = vpop.f32.mrf.mxu0 }
 0x191   : > { %v7145_v50 = vpop.f32.mrf.mxu1 }
 0x192   : > { %v7151_v26 = vpop.f32.mrf.mxu0 }
 0x193   : > { %v7149_v24 = vpop.f32.mrf.mxu1 }
 0x194   : > { %v7155_v41 = vpop.f32.mrf.mxu0 }
 0x195   : > { %v7153_v46 = vpop.f32.mrf.mxu1 }
 0x196   : > { %v7159_v59 = vpop.f32.mrf.mxu0 }
 0x197   : > { %v7157_v43 = vpop.f32.mrf.mxu1  ;;  %7590 = vst [vmem:[#allocation6_spill] sm:$0xff] %v7159_v59 }
 0x198   : > { %v7163_v11 = vpop.f32.mrf.mxu0 }
 0x199   : > { %v7161_v16 = vpop.f32.mrf.mxu1  ;;  %7592 = vst [vmem:[#allocation31_spill] sm:$0xff] %v7163_v11 }
 0x19a   : > { %7591 = vst [vmem:[#allocation30_spill] sm:$0xff] %v7161_v16  ;;  %v7167_v35 = vpop.f32.mrf.mxu0 }
 0x19b   : > { %v7165_v10 = vpop.f32.mrf.mxu1  ;;  %7594 = vst [vmem:[#allocation32_spill] sm:$0xff] %v7167_v35 }
 0x19c   : > { %7593 = vst [vmem:[#allocation7_spill] sm:$0xff] %v7165_v10  ;;  %v7171_v31 = vpop.f32.mrf.mxu0 }
 0x19d   : > { %v7169_v13 = vpop.f32.mrf.mxu1  ;;  %7596 = vst [vmem:[#allocation8_spill] sm:$0xff] %v7171_v31 }
 0x19e   : > { %7595 = vst [vmem:[#allocation33_spill] sm:$0xff] %v7169_v13  ;;  %v7175_v23 = vpop.f32.mrf.mxu0 }
 0x19f   : > { %v7173_v27 = vpop.f32.mrf.mxu1  ;;  %7598 = vst [vmem:[#allocation35_spill] sm:$0xff] %v7175_v23 }
 0x1a0   : > { %7597 = vst [vmem:[#allocation34_spill] sm:$0xff] %v7173_v27  ;;  %v7179_v7 = vpop.f32.mrf.mxu0 }
 0x1a1   : > { %v7177_v40 = vpop.f32.mrf.mxu1  ;;  %7600 = vst [vmem:[#allocation36_spill] sm:$0xff] %v7179_v7 }
 0x1a2   : > { %7599 = vst [vmem:[#allocation9_spill] sm:$0xff] %v7177_v40  ;;  %v7183_v16 = vpop.f32.mrf.mxu0 }
 0x1a3   : > { %v7181_v59 = vpop.f32.mrf.mxu1  ;;  %7602 = vst [vmem:[#allocation10_spill] sm:$0xff] %v7183_v16 }
 0x1a4   : > { %7601 = vst [vmem:[#allocation37_spill] sm:$0xff] %v7181_v59  ;;  %v7187_v10 = vpop.f32.mrf.mxu0 }
 0x1a5   : > { %v7185_v11 = vpop.f32.mrf.mxu1  ;;  %7604 = vst [vmem:[#allocation12_spill] sm:$0xff] %v7187_v10 }
 0x1a6   : > { %7603 = vst [vmem:[#allocation11_spill] sm:$0xff] %v7185_v11  ;;  %v7191_v13 = vpop.f32.mrf.mxu0 }
 0x1a7   : > { %v7189_v35 = vpop.f32.mrf.mxu1  ;;  %7606 = vst [vmem:[#allocation14_spill] sm:$0xff] %v7191_v13 }
 0x1a8   : > { %7605 = vst [vmem:[#allocation40_spill] sm:$0xff] %v7189_v35  ;;  %v7195_v27 = vpop.f32.mrf.mxu0  ;;  %v2869_v35 = vadd.f32 %v5614_v57, %v6998_v63  ;;  %v2870_v57 = vadd.f32 %v7101_v30, %v7007_v42 }
 0x1a9   : > { %v7193_v31 = vpop.f32.mrf.mxu1  ;;  %7608 = vst [vmem:[#allocation3_spill] sm:$0xff] %v7195_v27  ;;  %v2868_v27 = vadd.f32 %v2709_v58, %v7001_v1  ;;  %v2873_v1 = vadd.f32 %v7105_v47, %v7010_v5 }
 0x1aa   : > { %7607 = vst [vmem:[#allocation13_spill] sm:$0xff] %v7193_v31  ;;  %v7199_v40 = vpop.f32.mrf.mxu0 }
 0x1ab   : > { %v7197_v23 = vpop.f32.mrf.mxu1  ;;  %7610 = vst [vmem:[#allocation15_spill] sm:$0xff] %v7199_v40 }
 0x1ac   : > { %7609 = vst [vmem:[#allocation16_spill] sm:$0xff] %v7197_v23  ;;  %v7203_v59 = vpop.f32.mrf.mxu0 }
 0x1ad   : > { %v7201_v7 = vpop.f32.mrf.mxu1  ;;  %7612 = vst [vmem:[#allocation18_spill] sm:$0xff] %v7203_v59  ;;  %v2871_v59 = vadd.f32 %v7097_v20, %v7004_v9  ;;  %v2872_v9 = vadd.f32 %v7109_v62, %v7013_v53  ;;  %v2875_v53 = vadd.f32 %v7113_v37, %v7016_v8  ;;  %v2874_v8 = vadd.f32 %v7117_v34, %v7019_v60 }
 0x1ae   : > { %7611 = vst [vmem:[#allocation17_spill] sm:$0xff] %v7201_v7  ;;  %v7207_v10 = vpop.f32.mrf.mxu0  ;;  %v3326_v7 = vadd.f32 %v7091_v38, %v2869_v35  ;;  %v2877_v37 = vadd.f32 %v7121_v15, %v7022_v45 }
 0x1af   : > { %v7205_v16 = vpop.f32.mrf.mxu1  ;;  %7614 = vst [vmem:[#allocation41_spill] sm:$0xff] %v7207_v10  ;;  %v3325_v10 = vadd.f32 %v7095_v61, %v2868_v27  ;;  %v3329_v47 = vadd.f32 %v7111_v29, %v2872_v9 }
 0x1b0   : > { %7613 = vst [vmem:[#allocation19_spill] sm:$0xff] %v7205_v16  ;;  %v7212_v31 = vpop.f32.mrf.mxu0 }
 0x1b1   : > { %v7210_v13 = vpop.f32.mrf.mxu1  ;;  %7615 = vst [vmem:[#allocation42_spill] sm:$0xff] %v7212_v31 }
 0x1b2   : > { %v7217_v40 = vpop.f32.mrf.mxu0 }
 0x1b3   : > { %v7215_v23 = vpop.f32.mrf.mxu1  ;;  %7616 = vst [vmem:[#allocation43_spill] sm:$0xff] %v7217_v40  ;;  %v3328_v40 = vadd.f32 %v7099_v54, %v2871_v59 }
 0x1b4   : > { %v5764_v11 = vpop.f32.mrf.mxu0 }
 0x1b5   : > { %v5714_v16 = vpop.f32.mrf.mxu1 }
 0x1b6   : > { %v3780_v63 = vadd.f32 %v5714_v16, %v3326_v7  ;;  %v4074_v31 = vpop.f32.mrf.mxu0  ;;  %v3327_v16 = vadd.f32 %v7103_v14, %v2870_v57 }
 0x1b7   : > { %v3620_v58 = vpop.f32.mrf.mxu1 }
 0x1b8   : > { %v4234_v35 = vadd.f32 %v5764_v11, %v3780_v63  ;;  %v3779_v38 = vadd.f32 %v3620_v58, %v3325_v10  ;;  %v5767_v27 = vpop.f32.mrf.mxu0  ;;  %v3330_v10 = vadd.f32 %v7107_v49, %v2873_v1  ;;  %v3332_v58 = vadd.f32 %v7115_v4, %v2875_v53 }
 0x1b9   : > { %v5717_v20 = vpop.f32.mrf.mxu1  ;;  %v3331_v4 = vadd.f32 %v7119_v12, %v2874_v8  ;;  %v2880_v8 = vadd.f32 %v7141_v56, %v7037_v39 }
 0x1ba   : > { %vm4330_vm3 = vcmp.gt.f32.partialorder %v4234_v35, 0.0  ;;  %v4362_v42 = vmul.f32 0.1, %v4234_v35  ;;  %v4233_v5 = vadd.f32 %v4074_v31, %v3779_v38  ;;  %v3782_v7 = vadd.f32 %v5717_v20, %v3328_v40  ;;  %v4084_v59 = vpop.f32.mrf.mxu0 }
 0x1bb   : > { %v3630_v11 = vpop.f32.mrf.mxu1  ;;  %v2876_v20 = vadd.f32 %v7125_v2, %v7025_v19 }
 0x1bc   : > { %v4394_v61 = vsel %vm4330_vm3, %v4234_v35, %v4362_v42  ;;  %vm4329_vm4 = vcmp.gt.f32.partialorder %v4233_v5, 0.0  ;;  %v4361_v54 = vmul.f32 0.1, %v4233_v5  ;;  %v4236_v30 = vadd.f32 %v5767_v27, %v3782_v7  ;;  %v5770_v62 = vpop.f32.mrf.mxu0 }
 0x1bd   : > { %4427 = vst.msk [vmem:[%s7234_s14 + $0x8] sm:$0xff] %vm4425_vm2, %v4394_v61  ;;  %v3781_v31 = vadd.f32 %v3630_v11, %v3327_v16  ;;  %v5720_v40 = vpop.f32.mrf.mxu1  ;;  %v2879_v7 = vadd.f32 %v7129_v32, %v7028_v21 }
 0x1be   : > { %v4393_v14 = vsel %vm4329_vm4, %v4233_v5, %v4361_v54  ;;  %vm4332_vm5 = vcmp.gt.f32.partialorder %v4236_v30, 0.0  ;;  %v4364_v49 = vmul.f32 0.1, %v4236_v30  ;;  %v3784_v63 = vadd.f32 %v5720_v40, %v3330_v10  ;;  %v4094_v1 = vpop.f32.mrf.mxu0 }
 0x1bf   : > { %4426 = vst.msk [vmem:[%s7234_s14] sm:$0xff] %vm4425_vm2, %v4393_v14  ;;  %v4235_v57 = vadd.f32 %v4084_v59, %v3781_v31  ;;  %v3640_v29 = vpop.f32.mrf.mxu1  ;;  %v3334_v5 = vadd.f32 %v7123_v44, %v2877_v37  ;;  %v3333_v59 = vadd.f32 %v7127_v18, %v2876_v20  ;;  %v3337_v20 = vadd.f32 %v7143_v3, %v2880_v8  ;;  %v7623_v8 = vld [vmem:[#allocation33_spill] sm:$0xff] }
 0x1c0   : > { %v4396_v35 = vsel %vm4332_vm5, %v4236_v30, %v4364_v49  ;;  %v4238_v38 = vadd.f32 %v5770_v62, %v3784_v63  ;;  %v3783_v9 = vadd.f32 %v3640_v29, %v3329_v47  ;;  %v5773_v45 = vpop.f32.mrf.mxu0  ;;  %v2878_v30 = vadd.f32 %v7133_v48, %v7031_v25 }
 0x1c1   : > { %4429 = vst.msk [vmem:[%s7234_s14 + $0x18] sm:$0xff] %vm4425_vm2, %v4396_v35  ;;  %vm4331_vm6 = vcmp.gt.f32.partialorder %v4235_v57, 0.0  ;;  %v4363_v60 = vmul.f32 0.1, %v4235_v57  ;;  %v5723_v34 = vpop.f32.mrf.mxu1  ;;  %v2881_v47 = vadd.f32 %v7137_v17, %v7034_v51  ;;  %v3336_v62 = vadd.f32 %v7131_v28, %v2879_v7 }
 0x1c2   : > { %vm4334_vm7 = vcmp.gt.f32.partialorder %v4238_v38, 0.0  ;;  %v4366_v15 = vmul.f32 0.1, %v4238_v38  ;;  %v4237_v27 = vadd.f32 %v4094_v1, %v3783_v9  ;;  %v3786_v42 = vadd.f32 %v5723_v34, %v3332_v58  ;;  %v4104_v16 = vpop.f32.mrf.mxu0 }
 0x1c3   : > { %v4395_v19 = vsel %vm4331_vm6, %v4235_v57, %v4363_v60  ;;  %v3650_v2 = vpop.f32.mrf.mxu1  ;;  %v3335_v28 = vadd.f32 %v7135_v52, %v2878_v30  ;;  %v3338_v29 = vadd.f32 %v7139_v22, %v2881_v47  ;;  %v2883_v1 = vadd.f32 %v7145_v50, %v7040_v33 }
 0x1c4   : > { %4428 = vst.msk [vmem:[%s7234_s14 + $0x10] sm:$0xff] %vm4425_vm2, %v4395_v19  ;;  %v4398_v10 = vsel %vm4334_vm7, %v4238_v38, %v4366_v15  ;;  %vm4333_vm8 = vcmp.gt.f32.partialorder %v4237_v27, 0.0  ;;  %v4365_v53 = vmul.f32 0.1, %v4237_v27  ;;  %v4240_v11 = vadd.f32 %v5773_v45, %v3786_v42  ;;  %v5776_v44 = vpop.f32.mrf.mxu0 }
 0x1c5   : > { %4431 = vst.msk [vmem:[%s7234_s14 + $0x28] sm:$0xff] %vm4425_vm2, %v4398_v10  ;;  %v3785_v12 = vadd.f32 %v3650_v2, %v3331_v4  ;;  %v5726_v61 = vpop.f32.mrf.mxu1  ;;  %v2882_v45 = vadd.f32 %v7149_v24, %v7043_v0  ;;  %v2885_v15 = vadd.f32 %v7153_v46, %v7046_v55  ;;  %v3340_v4 = vadd.f32 %v7147_v6, %v2883_v1 }
 0x1c6   : > { %v4397_v54 = vsel %vm4333_vm8, %v4237_v27, %v4365_v53  ;;  %vm4336_vm9 = vcmp.gt.f32.partialorder %v4240_v11, 0.0  ;;  %v4368_v21 = vmul.f32 0.1, %v4240_v11  ;;  %v3788_v32 = vadd.f32 %v5726_v61, %v3334_v5  ;;  %v4114_v40 = vpop.f32.mrf.mxu0 }
 0x1c7   : > { %4430 = vst.msk [vmem:[%s7234_s14 + $0x20] sm:$0xff] %vm4425_vm2, %v4397_v54  ;;  %v4239_v31 = vadd.f32 %v4104_v16, %v3785_v12  ;;  %v3660_v18 = vpop.f32.mrf.mxu1  ;;  %v2884_v2 = vadd.f32 %v7157_v43, %v7049_v36  ;;  %v3339_v6 = vadd.f32 %v7151_v26, %v2882_v45  ;;  %v3342_v53 = vadd.f32 %v7155_v41, %v2885_v15  ;;  %v7629_v45 = vld [vmem:[#allocation24_spill] sm:$0xff]  ;;  %v7630_v15 = vld [vmem:[#allocation9_spill] sm:$0xff] }
 0x1c8   : > { %v4400_v14 = vsel %vm4336_vm9, %v4240_v11, %v4368_v21  ;;  %v4242_v49 = vadd.f32 %v5776_v44, %v3788_v32  ;;  %v3787_v63 = vadd.f32 %v3660_v18, %v3333_v59  ;;  %v5779_v51 = vpop.f32.mrf.mxu0  ;;  %v7617_v11 = vld [vmem:[#allocation20_spill] sm:$0xff]  ;;  %v7618_v59 = vld [vmem:[#allocation30_spill] sm:$0xff] }
 0x1c9   : > { %4433 = vst.msk [vmem:[%s7234_s14 + $0x38] sm:$0xff] %vm4425_vm2, %v4400_v14  ;;  %vm4335_vm10 = vcmp.gt.f32.partialorder %v4239_v31, 0.0  ;;  %v4367_v25 = vmul.f32 0.1, %v4239_v31  ;;  %v5729_v48 = vpop.f32.mrf.mxu1  ;;  %v2887_v12 = vadd.f32 %v7618_v59, %v7617_v11  ;;  %v7619_v32 = vld [vmem:[#allocation6_spill] sm:$0xff]  ;;  %v7621_v14 = vld [vmem:[#allocation7_spill] sm:$0xff] }
 0x1ca   : > { %vm4338_vm11 = vcmp.gt.f32.partialorder %v4242_v49, 0.0  ;;  %v4370_v17 = vmul.f32 0.1, %v4242_v49  ;;  %v4241_v37 = vadd.f32 %v4114_v40, %v3787_v63  ;;  %v3790_v57 = vadd.f32 %v5729_v48, %v3336_v62  ;;  %v4124_v58 = vpop.f32.mrf.mxu0  ;;  %v7620_v62 = vld [vmem:[#allocation21_spill] sm:$0xff]  ;;  %v7622_v63 = vld [vmem:[#allocation22_spill] sm:$0xff] }
 0x1cb   : > { %v4399_v39 = vsel %vm4335_vm10, %v4239_v31, %v4367_v25  ;;  %v3670_v56 = vpop.f32.mrf.mxu1  ;;  %v3341_v30 = vadd.f32 %v7619_v32, %v2884_v2  ;;  %v2889_v25 = vadd.f32 %v7623_v8, %v7622_v63  ;;  %v7631_v2 = vld [vmem:[#allocation35_spill] sm:$0xff]  ;;  %v7633_v11 = vld [vmem:[#allocation37_spill] sm:$0xff] }
 0x1cc   : > { %4432 = vst.msk [vmem:[%s7234_s14 + $0x30] sm:$0xff] %vm4425_vm2, %v4399_v39  ;;  %v4402_v35 = vsel %vm4338_vm11, %v4242_v49, %v4370_v17  ;;  %vm4337_vm12 = vcmp.gt.f32.partialorder %v4241_v37, 0.0  ;;  %v4369_v38 = vmul.f32 0.1, %v4241_v37  ;;  %v4244_v9 = vadd.f32 %v5779_v51, %v3790_v57  ;;  %v5782_v22 = vpop.f32.mrf.mxu0  ;;  %v7625_v39 = vld [vmem:[#allocation23_spill] sm:$0xff] }
 0x1cd   : > { %4435 = vst.msk [vmem:[%s7234_s14 + $0x48] sm:$0xff] %vm4425_vm2, %v4402_v35  ;;  %v3789_v52 = vadd.f32 %v3670_v56, %v3335_v28  ;;  %v5732_v60 = vpop.f32.mrf.mxu1  ;;  %v2886_v49 = vadd.f32 %v7621_v14, %v7620_v62  ;;  %v7626_v56 = vld [vmem:[#allocation34_spill] sm:$0xff] }
 0x1ce   : > { %v4401_v34 = vsel %vm4337_vm12, %v4241_v37, %v4369_v38  ;;  %vm4340_vm13 = vcmp.gt.f32.partialorder %v4244_v9, 0.0  ;;  %v4372_v33 = vmul.f32 0.1, %v4244_v9  ;;  %v3792_v50 = vadd.f32 %v5732_v60, %v3338_v29  ;;  %v4134_v42 = vpop.f32.mrf.mxu0  ;;  %v7624_v37 = vld [vmem:[#allocation31_spill] sm:$0xff] }
 0x1cf   : > { %4434 = vst.msk [vmem:[%s7234_s14 + $0x40] sm:$0xff] %vm4425_vm2, %v4401_v34  ;;  %v4243_v27 = vadd.f32 %v4124_v58, %v3789_v52  ;;  %v3680_v3 = vpop.f32.mrf.mxu1  ;;  %v3344_v57 = vadd.f32 %v7624_v37, %v2887_v12  ;;  %v2888_v58 = vadd.f32 %v7626_v56, %v7625_v39  ;;  %v7634_v12 = vld [vmem:[#allocation39_spill] sm:$0xff]  ;;  %v7641_v37 = vld [vmem:[#allocation4_spill] sm:$0xff] }
 0x1d0   : > { %v4404_v5 = vsel %vm4340_vm13, %v4244_v9, %v4372_v33  ;;  %v4246_v7 = vadd.f32 %v5782_v22, %v3792_v50  ;;  %v3791_v19 = vadd.f32 %v3680_v3, %v3337_v20  ;;  %v5785_v55 = vpop.f32.mrf.mxu0  ;;  %v7627_v22 = vld [vmem:[#allocation32_spill] sm:$0xff] }
 0x1d1   : > { %4437 = vst.msk [vmem:[%s7234_s14 + $0x58] sm:$0xff] %vm4425_vm2, %v4404_v5  ;;  %vm4339_vm14 = vcmp.gt.f32.partialorder %v4243_v27, 0.0  ;;  %v4371_v0 = vmul.f32 0.1, %v4243_v27  ;;  %v5735_v24 = vpop.f32.mrf.mxu1  ;;  %v3343_v34 = vadd.f32 %v7627_v22, %v2886_v49  ;;  %v7628_v33 = vld [vmem:[#allocation8_spill] sm:$0xff] }
 0x1d2   : > { %vm4342_vm15 = vcmp.gt.f32.partialorder %v4246_v7, 0.0  ;;  %v4374_v46 = vmul.f32 0.1, %v4246_v7  ;;  %v4245_v16 = vadd.f32 %v4134_v42, %v3791_v19  ;;  %v3794_v10 = vadd.f32 %v5735_v24, %v3340_v4  ;;  %v4144_v61 = vpop.f32.mrf.mxu0 }
 0x1d3   : > { %v4403_v36 = vsel %vm4339_vm14, %v4243_v27, %v4371_v0  ;;  %v3690_v43 = vpop.f32.mrf.mxu1  ;;  %v3346_v50 = vadd.f32 %v7628_v33, %v2889_v25  ;;  %v2891_v27 = vadd.f32 %v7630_v15, %v7629_v45  ;;  %v3345_v0 = vadd.f32 %v7631_v2, %v2888_v58  ;;  %v7639_v25 = vld [vmem:[#allocation10_spill] sm:$0xff]  ;;  %v7645_v45 = vld [vmem:[#allocation16_spill] sm:$0xff] }
 0x1d4   : > { %4436 = vst.msk [vmem:[%s7234_s14 + $0x50] sm:$0xff] %vm4425_vm2, %v4403_v36  ;;  %v4406_v44 = vsel %vm4342_vm15, %v4246_v7, %v4374_v46  ;;  %vm4341_vm0 = vcmp.gt.f32.partialorder %v4245_v16, 0.0  ;;  %v4373_v54 = vmul.f32 0.1, %v4245_v16  ;;  %v4248_v21 = vadd.f32 %v5785_v55, %v3794_v10  ;;  %v5788_v41 = vpop.f32.mrf.mxu0  ;;  %v7635_v36 = vld [vmem:[#allocation11_spill] sm:$0xff] }
 0x1d5   : > { %4439 = vst.msk [vmem:[%s7234_s14 + $0x68] sm:$0xff] %vm4425_vm2, %v4406_v44  ;;  %v3793_v26 = vadd.f32 %v3690_v43, %v3339_v6  ;;  %v5738_v47 = vpop.f32.mrf.mxu1  ;;  %v2893_v43 = vadd.f32 %v7635_v36, %v7634_v12 }
 0x1d6   : > { %v4405_v31 = vsel %vm4341_vm0, %v4245_v16, %v4373_v54  ;;  %vm4344_vm1 = vcmp.gt.f32.partialorder %v4248_v21, 0.0  ;;  %v4376_v18 = vmul.f32 0.1, %v4248_v21  ;;  %v3796_v40 = vadd.f32 %v5738_v47, %v3342_v53  ;;  %v4154_v17 = vpop.f32.mrf.mxu0  ;;  %v7632_v53 = vld [vmem:[#allocation38_spill] sm:$0xff] }
 0x1d7   : > { %4438 = vst.msk [vmem:[%s7234_s14 + $0x60] sm:$0xff] %vm4425_vm2, %v4405_v31  ;;  %v4247_v48 = vadd.f32 %v4144_v61, %v3793_v26  ;;  %v3700_v51 = vpop.f32.mrf.mxu1  ;;  %v2890_v59 = vadd.f32 %v7633_v11, %v7632_v53  ;;  %v7638_v31 = vld [vmem:[#allocation40_spill] sm:$0xff] }
 0x1d8   : > { %v4408_v28 = vsel %vm4344_vm1, %v4248_v21, %v4376_v18  ;;  %v4250_v29 = vadd.f32 %v5788_v41, %v3796_v40  ;;  %v3795_v1 = vadd.f32 %v3700_v51, %v3341_v30  ;;  %v5791_v9 = vpop.f32.mrf.mxu0  ;;  %v7636_v21 = vld [vmem:[#allocation36_spill] sm:$0xff]  ;;  %v7637_v41 = vld [vmem:[#allocation25_spill] sm:$0xff] }
 0x1d9   : > { %4441 = vst.msk [vmem:[%s7234_s14 + $0x78] sm:$0xff] %vm4425_vm2, %v4408_v28  ;;  %vm4343_vm3 = vcmp.gt.f32.partialorder %v4247_v48, 0.0  ;;  %v4375_v35 = vmul.f32 0.1, %v4247_v48  ;;  %v5741_v38 = vpop.f32.mrf.mxu1  ;;  %v3348_v32 = vadd.f32 %v7636_v21, %v2891_v27  ;;  %v2892_v18 = vadd.f32 %v7638_v31, %v7637_v41  ;;  %v7640_v51 = vld [vmem:[#allocation12_spill] sm:$0xff]  ;;  %v7646_v27 = vld [vmem:[#allocation27_spill] sm:$0xff] }
 0x1da   : > { %vm4346_vm4 = vcmp.gt.f32.partialorder %v4250_v29, 0.0  ;;  %v4378_v20 = vmul.f32 0.1, %v4250_v29  ;;  %v4249_v52 = vadd.f32 %v4154_v17, %v3795_v1  ;;  %v3798_v60 = vadd.f32 %v5741_v38, %v3344_v57  ;;  %v4164_v4 = vpop.f32.mrf.mxu0  ;;  %v7642_v57 = vld [vmem:[#allocation13_spill] sm:$0xff]  ;;  %v7643_v38 = vld [vmem:[#allocation14_spill] sm:$0xff]  ;;  %v7653_v21 = vld [vmem:[#allocation28_spill] sm:$0xff] }
 0x1db   : > { %v4407_v3 = vsel %vm4343_vm3, %v4247_v48, %v4375_v35  ;;  %v3710_v42 = vpop.f32.mrf.mxu1  ;;  %v3347_v48 = vadd.f32 %v7639_v25, %v2890_v59  ;;  %v3350_v17 = vadd.f32 %v7640_v51, %v2893_v43  ;;  %v2895_v28 = vadd.f32 %v7642_v57, %v7641_v37  ;;  %v7651_v43 = vld [vmem:[#allocation15_spill] sm:$0xff] }
 0x1dc   : > { %4440 = vst.msk [vmem:[%s7234_s14 + $0x70] sm:$0xff] %vm4425_vm2, %v4407_v3  ;;  %v4410_v5 = vsel %vm4346_vm4, %v4250_v29, %v4378_v20  ;;  %vm4345_vm5 = vcmp.gt.f32.partialorder %v4249_v52, 0.0  ;;  %v4377_v7 = vmul.f32 0.1, %v4249_v52  ;;  %v4252_v19 = vadd.f32 %v5791_v9, %v3798_v60  ;;  %v5794_v46 = vpop.f32.mrf.mxu0  ;;  %v7647_v3 = vld [vmem:[#allocation17_spill] sm:$0xff] }
 0x1dd   : > { %4443 = vst.msk [vmem:[%s7234_s14 + $0x88] sm:$0xff] %vm4425_vm2, %v4410_v5  ;;  %v3797_v24 = vadd.f32 %v3710_v42, %v3343_v34  ;;  %v5744_v55 = vpop.f32.mrf.mxu1  ;;  %v3349_v9 = vadd.f32 %v7643_v38, %v2892_v18  ;;  %v2897_v42 = vadd.f32 %v7647_v3, %v7646_v27 }
 0x1de   : > { %v4409_v16 = vsel %vm4345_vm5, %v4249_v52, %v4377_v7  ;;  %vm4348_vm6 = vcmp.gt.f32.partialorder %v4252_v19, 0.0  ;;  %v4380_v10 = vmul.f32 0.1, %v4252_v19  ;;  %v3800_v6 = vadd.f32 %v5744_v55, %v3346_v50  ;;  %v4174_v54 = vpop.f32.mrf.mxu0  ;;  %v7644_v50 = vld [vmem:[#allocation26_spill] sm:$0xff] }
 0x1df   : > { %4442 = vst.msk [vmem:[%s7234_s14 + $0x80] sm:$0xff] %vm4425_vm2, %v4409_v16  ;;  %v4251_v61 = vadd.f32 %v4164_v4, %v3797_v24  ;;  %v3720_v44 = vpop.f32.mrf.mxu1  ;;  %v2894_v15 = vadd.f32 %v7645_v45, %v7644_v50  ;;  %v7650_v16 = vld [vmem:[#allocation19_spill] sm:$0xff] }
 0x1e0   : > { %v4412_v30 = vsel %vm4348_vm6, %v4252_v19, %v4380_v10  ;;  %v4254_v26 = vadd.f32 %v5794_v46, %v3800_v6  ;;  %v3799_v47 = vadd.f32 %v3720_v44, %v3345_v0  ;;  %v5797_v14 = vpop.f32.mrf.mxu0  ;;  %v7648_v19 = vld [vmem:[#allocation3_spill] sm:$0xff]  ;;  %v7649_v46 = vld [vmem:[#allocation5_spill] sm:$0xff]  ;;  %v7652_v44 = vld [vmem:[#allocation18_spill] sm:$0xff] }
 0x1e1   : > { %4445 = vst.msk [vmem:[%s7234_s14 + $0x98] sm:$0xff] %vm4425_vm2, %v4412_v30  ;;  %vm4347_vm7 = vcmp.gt.f32.partialorder %v4251_v61, 0.0  ;;  %v4379_v40 = vmul.f32 0.1, %v4251_v61  ;;  %v5747_v62 = vpop.f32.mrf.mxu1  ;;  %v3352_v2 = vadd.f32 %v7648_v19, %v2895_v28  ;;  %v2896_v10 = vadd.f32 %v7650_v16, %v7649_v46  ;;  %v7656_v28 = vld [vmem:[#allocation42_spill] sm:$0xff] }
 0x1e2   : > { %vm4350_vm8 = vcmp.gt.f32.partialorder %v4254_v26, 0.0  ;;  %v4382_v49 = vmul.f32 0.1, %v4254_v26  ;;  %v4253_v63 = vadd.f32 %v4174_v54, %v3799_v47  ;;  %v3802_v8 = vadd.f32 %v5747_v62, %v3348_v32  ;;  %v4184_v39 = vpop.f32.mrf.mxu0 }
 0x1e3   : > { %v4411_v29 = vsel %vm4347_vm7, %v4251_v61, %v4379_v40  ;;  %v3730_v1 = vpop.f32.mrf.mxu1  ;;  %v3351_v61 = vadd.f32 %v7651_v43, %v2894_v15  ;;  %v3354_v54 = vadd.f32 %v7652_v44, %v2897_v42  ;;  %v2899_v32 = vadd.f32 %v7210_v13, %v7653_v21  ;;  %v7654_v40 = vld [vmem:[#allocation41_spill] sm:$0xff] }
 0x1e4   : > { %4444 = vst.msk [vmem:[%s7234_s14 + $0x90] sm:$0xff] %vm4425_vm2, %v4411_v29  ;;  %v4414_v56 = vsel %vm4350_vm8, %v4254_v26, %v4382_v49  ;;  %vm4349_vm9 = vcmp.gt.f32.partialorder %v4253_v63, 0.0  ;;  %v4381_v58 = vmul.f32 0.1, %v4253_v63  ;;  %v4256_v35 = vadd.f32 %v5797_v14, %v3802_v8  ;;  %v5800_v60 = vpop.f32.mrf.mxu0 }
 0x1e5   : > { %4447 = vst.msk [vmem:[%s7234_s14 + $0xa8] sm:$0xff] %vm4425_vm2, %v4414_v56  ;;  %v3801_v20 = vadd.f32 %v3730_v1, %v3347_v48  ;;  %v5750_v52 = vpop.f32.mrf.mxu1  ;;  %v3353_v62 = vadd.f32 %v7654_v40, %v2896_v10  ;;  %v7655_v48 = vld [vmem:[#allocation29_spill] sm:$0xff]  ;;  %v3356_v29 = vadd.f32 %v7656_v28, %v2899_v32 }
 0x1e6   : > { %v4413_v22 = vsel %vm4349_vm9, %v4253_v63, %v4381_v58  ;;  %vm4352_vm10 = vcmp.gt.f32.partialorder %v4256_v35, 0.0  ;;  %v4384_v34 = vmul.f32 0.1, %v4256_v35  ;;  %v3804_v33 = vadd.f32 %v5750_v52, %v3350_v17  ;;  %v4194_v7 = vpop.f32.mrf.mxu0  ;;  %v7657_v52 = vld [vmem:[#allocation43_spill] sm:$0xff] }
 0x1e7   : > { %4446 = vst.msk [vmem:[%s7234_s14 + $0xa0] sm:$0xff] %vm4425_vm2, %v4413_v22  ;;  %v4255_v4 = vadd.f32 %v4184_v39, %v3801_v20  ;;  %v3740_v5 = vpop.f32.mrf.mxu1  ;;  %v2898_v51 = vadd.f32 %v7215_v23, %v7655_v48 }
 0x1e8   : > { %v4416_v0 = vsel %vm4352_vm10, %v4256_v35, %v4384_v34  ;;  %v4258_v24 = vadd.f32 %v5800_v60, %v3804_v33  ;;  %v3803_v55 = vadd.f32 %v3740_v5, %v3349_v9  ;;  %v5803_v11 = vpop.f32.mrf.mxu0 }
 0x1e9   : > { %4449 = vst.msk [vmem:[%s7234_s14 + $0xb8] sm:$0xff] %vm4425_vm2, %v4416_v0  ;;  %vm4351_vm11 = vcmp.gt.f32.partialorder %v4255_v4, 0.0  ;;  %v4383_v6 = vmul.f32 0.1, %v4255_v4  ;;  %v5753_v53 = vpop.f32.mrf.mxu1  ;;  %v3355_v60 = vadd.f32 %v7657_v52, %v2898_v51 }
 0x1ea   : > { %vm4354_vm12 = vcmp.gt.f32.partialorder %v4258_v24, 0.0  ;;  %v4386_v59 = vmul.f32 0.1, %v4258_v24  ;;  %v4257_v12 = vadd.f32 %v4194_v7, %v3803_v55  ;;  %v3806_v36 = vadd.f32 %v5753_v53, %v3352_v2  ;;  %v4204_v47 = vpop.f32.mrf.mxu0 }
 0x1eb   : > { %v4415_v30 = vsel %vm4351_vm11, %v4255_v4, %v4383_v6  ;;  %v3750_v26 = vpop.f32.mrf.mxu1 }
 0x1ec   : > { %4448 = vst.msk [vmem:[%s7234_s14 + $0xb0] sm:$0xff] %vm4425_vm2, %v4415_v30  ;;  %v4418_v41 = vsel %vm4354_vm12, %v4258_v24, %v4386_v59  ;;  %vm4353_vm13 = vcmp.gt.f32.partialorder %v4257_v12, 0.0  ;;  %v4385_v31 = vmul.f32 0.1, %v4257_v12  ;;  %v4260_v18 = vadd.f32 %v5803_v11, %v3806_v36  ;;  %v5806_v63 = vpop.f32.mrf.mxu0 }
 0x1ed   : > { %4451 = vst.msk [vmem:[%s7234_s14 + $0xc8] sm:$0xff] %vm4425_vm2, %v4418_v41  ;;  %v3805_v14 = vadd.f32 %v3750_v26, %v3351_v61  ;;  %v5756_v49 = vpop.f32.mrf.mxu1 }
 0x1ee   : > { %v4417_v8 = vsel %vm4353_vm13, %v4257_v12, %v4385_v31  ;;  %vm4356_vm14 = vcmp.gt.f32.partialorder %v4260_v18, 0.0  ;;  %v4388_v13 = vmul.f32 0.1, %v4260_v18  ;;  %v3808_v25 = vadd.f32 %v5756_v49, %v3354_v54  ;;  %v4214_v57 = vpop.f32.mrf.mxu0 }
 0x1ef   : > { %4450 = vst.msk [vmem:[%s7234_s14 + $0xc0] sm:$0xff] %vm4425_vm2, %v4417_v8  ;;  %v4259_v17 = vadd.f32 %v4204_v47, %v3805_v14  ;;  %v3760_v37 = vpop.f32.mrf.mxu1 }
 0x1f0   : > { %v4420_v1 = vsel %vm4356_vm14, %v4260_v18, %v4388_v13  ;;  %v4262_v39 = vadd.f32 %v5806_v63, %v3808_v25  ;;  %v3807_v56 = vadd.f32 %v3760_v37, %v3353_v62  ;;  %v5809_v20 = vpop.f32.mrf.mxu0 }
 0x1f1   : > { %4453 = vst.msk [vmem:[%s7234_s14 + $0xd8] sm:$0xff] %vm4425_vm2, %v4420_v1  ;;  %vm4355_vm15 = vcmp.gt.f32.partialorder %v4259_v17, 0.0  ;;  %v4387_v58 = vmul.f32 0.1, %v4259_v17  ;;  %v5759_v35 = vpop.f32.mrf.mxu1 }
 0x1f2   : > { %vm4358_vm0 = vcmp.gt.f32.partialorder %v4262_v39, 0.0  ;;  %v4390_v38 = vmul.f32 0.1, %v4262_v39  ;;  %v4261_v23 = vadd.f32 %v4214_v57, %v3807_v56  ;;  %v3810_v9 = vadd.f32 %v5759_v35, %v3356_v29  ;;  %v4224_v42 = vpop.f32.mrf.mxu0 }
 0x1f3   : > { %v4419_v22 = vsel %vm4355_vm15, %v4259_v17, %v4387_v58  ;;  %v3770_v34 = vpop.f32.mrf.mxu1 }
 0x1f4   : > { %4452 = vst.msk [vmem:[%s7234_s14 + $0xd0] sm:$0xff] %vm4425_vm2, %v4419_v22  ;;  %v4422_v33 = vsel %vm4358_vm0, %v4262_v39, %v4390_v38  ;;  %vm4357_vm1 = vcmp.gt.f32.partialorder %v4261_v23, 0.0  ;;  %v4389_v50 = vmul.f32 0.1, %v4261_v23  ;;  %v4264_v45 = vadd.f32 %v5809_v20, %v3810_v9 }
 0x1f5   : > { %4455 = vst.msk [vmem:[%s7234_s14 + $0xe8] sm:$0xff] %vm4425_vm2, %v4422_v33  ;;  %v3809_v15 = vadd.f32 %v3770_v34, %v3355_v60 }
 0x1f6   : > { %v4421_v27 = vsel %vm4357_vm1, %v4261_v23, %v4389_v50  ;;  %vm4360_vm3 = vcmp.gt.f32.partialorder %v4264_v45, 0.0  ;;  %v4392_v3 = vmul.f32 0.1, %v4264_v45 }
 0x1f7   : > { %4454 = vst.msk [vmem:[%s7234_s14 + $0xe0] sm:$0xff] %vm4425_vm2, %v4421_v27  ;;  %v4263_v4 = vadd.f32 %v4224_v42, %v3809_v15 }
 0x1f8   : > { %v4424_v5 = vsel %vm4360_vm3, %v4264_v45, %v4392_v3 }
 0x1f9   : > { %4457 = vst.msk [vmem:[%s7234_s14 + $0xf8] sm:$0xff] %vm4425_vm2, %v4424_v5  ;;  %vm4359_vm4 = vcmp.gt.f32.partialorder %v4263_v4, 0.0  ;;  %v4391_v7 = vmul.f32 0.1, %v4263_v4 }
 0x1fb   : > { %v4423_v19 = vsel %vm4359_vm4, %v4263_v4, %v4391_v7 }
 0x1fc   : > { %4456 = vst.msk [vmem:[%s7234_s14 + $0xf0] sm:$0xff] %vm4425_vm2, %v4423_v19 }
 0x1fd PF: > { %s12_s11 = sadd.s32 1, %s5859_s11   ;;  %s7658_s9 = smov %s5855_s10 }
 0x1fe   : > { %p9_p5 = scmp.ge.s32.totalorder %s12_s11, 4   ;;  %s7659_s10 = smov %s7661_s12 }
 0x200   :  { %11 = sbr.rel (!%p9_p5) target bundleno = 2 (0x2), region = 69 }

</bundles_post_ra>
